<compile_context>
chip_gen: v7x
topology: tpu7x:2x2x1
jax: 0.10.0
libtpu: 0.0.40
codegen_flags: <defaults>
</compile_context>

<pallas_src>
import jax
import jax.numpy as jnp
import numpy as np
from jax.experimental import pallas as pl
from jax.experimental.pallas import tpu as pltpu


def _round_up(x, m):
    return ((x + m - 1) // m) * m


def _make_kernel(k, stride, th, wout, cin, cout_p):
    tm = th * wout

    def kernel(x_ref, w_ref, b_ref, o_ref):
        # x_ref: (1, Hp_ext, Wp, Cin)  whole padded image of the current batch
        # w_ref: (K*K, Cin, Cout_p)    resident weights, (kh, kw) major
        # b_ref: (1, Cout_p)           resident bias (f32)
        # o_ref: (tm, Cout_p)          lane-dense output tile
        i = pl.program_id(1)
        row0 = pl.multiple_of(i * (th * stride), 8)   # th is a multiple of 8
        acc = jnp.zeros((tm, cout_p), jnp.float32)
        for kh in range(k):
            if stride == 1:
                r_sl = pl.ds(row0 + kh, th)
            else:
                r_sl = pl.ds(row0 + kh, th, stride=stride)
            for kw in range(k):
                if stride == 1:
                    c_sl = pl.ds(kw, wout)
                else:
                    c_sl = pl.ds(kw, wout, stride=stride)
                slab = x_ref[0, r_sl, c_sl, :]                 # (th, wout, cin)
                a2d = slab.reshape(tm, cin)
                acc = acc + jnp.dot(a2d, w_ref[kh * k + kw],
                                    preferred_element_type=jnp.float32)
        o_ref[...] = (acc + b_ref[...]).astype(o_ref.dtype)

    return kernel


def new_conv_forward(x_nchw, weight, bias, stride, *, tm_target=1024,
                     compute_dtype=jnp.float32):
    """ReflectionPad2d(k//2) followed by Conv2d(Cin, Cout, k, stride).

    x_nchw: (N, Cin, H, W); weight: (Cout, Cin, K, K) [PyTorch]; bias: (Cout,)
    Returns (N, Cout, Hout, Wout), matching the PyTorch module's forward.
    """
    n, cin, h, w = x_nchw.shape
    cout, _, k, _ = weight.shape
    pad = k // 2  # n_pad = floor(kernel_size / 2)

    # Reflection padding + NHWC layout (pure memory re-layout glue, done in XLA).
    xp = jnp.pad(x_nchw, ((0, 0), (0, 0), (pad, pad), (pad, pad)),
                 mode="reflect")
    hp, wp = h + 2 * pad, w + 2 * pad
    hout = (hp - k) // stride + 1
    wout = (wp - k) // stride + 1
    x_nhwc = jnp.transpose(xp, (0, 2, 3, 1))                   # (N, Hp, Wp, Cin)

    # Output-row tile: ~tm_target pixels per grid step, th a multiple of 8.
    th = _round_up(max(1, tm_target // max(wout, 1)), 8)
    th = min(th, _round_up(hout, 8))
    num_row_tiles = (hout + th - 1) // th
    hout_pad = num_row_tiles * th
    tm = th * wout

    # Extend with zero rows so the last (partial) row tile reads in-bounds;
    # the corresponding output rows are sliced off below.
    hp_ext = max(hp, (hout_pad - 1) * stride + k)
    if hp_ext > hp:
        x_nhwc = jnp.pad(x_nhwc, ((0, 0), (0, hp_ext - hp), (0, 0), (0, 0)))

    # Lane-dense output channels.
    cout_p = _round_up(cout, 128)

    # Weight -> (K*K, Cin, Cout_p), ordering matched to the kernel loops.
    w_kk = jnp.transpose(weight, (2, 3, 1, 0)).reshape(k * k, cin, cout)
    if cout_p != cout:
        w_kk = jnp.pad(w_kk, ((0, 0), (0, 0), (0, cout_p - cout)))
        b_p = jnp.pad(bias, (0, cout_p - cout))
    else:
        b_p = bias
    b_mat = b_p.reshape(1, cout_p).astype(jnp.float32)

    w_kk = w_kk.astype(compute_dtype)
    if x_nhwc.dtype != compute_dtype:
        x_nhwc = x_nhwc.astype(compute_dtype)

    kernel = _make_kernel(k, stride, th, wout, cin, cout_p)

    m_total = n * hout_pad * wout
    itemsize = jnp.dtype(x_nhwc.dtype).itemsize
    w_itemsize = jnp.dtype(w_kk.dtype).itemsize
    out_itemsize = jnp.dtype(x_nchw.dtype).itemsize
    flops = 2 * n * hout * wout * k * k * cin * cout
    bytes_accessed = int(x_nhwc.size * itemsize
                         + w_kk.size * w_itemsize
                         + b_mat.size * 4
                         + m_total * cout_p * out_itemsize)
    cost = pl.CostEstimate(flops=flops, transcendentals=0,
                           bytes_accessed=bytes_accessed)

    # VMEM budget: double-buffered image + output blocks, resident weights/bias.
    need = (2 * (hp_ext * wp * cin * itemsize + tm * cout_p * out_itemsize)
            + 2 * (k * k * cin * cout_p * w_itemsize)
            + 2 * 8 * 128 * 4 + (2 << 20))
    params = dict(dimension_semantics=("parallel", "parallel"))
    if need > (16 << 20):  # only raise the scoped limit when actually needed
        try:
            vmem_cap = int(pltpu.get_tpu_info().vmem_capacity_bytes)
        except Exception:
            vmem_cap = 64 << 20   # conservative: v7x per-TensorCore capacity
        params["vmem_limit_bytes"] = int(min(need, (vmem_cap * 7) // 8))

    out2d = pl.pallas_call(
        kernel,
        out_shape=jax.ShapeDtypeStruct((m_total, cout_p), x_nchw.dtype),
        grid_spec=pltpu.PrefetchScalarGridSpec(
            num_scalar_prefetch=0,
            grid=(n, num_row_tiles),
            in_specs=[
                # Whole padded image of the current batch element; block index
                # constant along the row-tile axis -> fetched once per batch.
                pl.BlockSpec((1, hp_ext, wp, cin), lambda b, i: (b, 0, 0, 0)),
                # Resident weights / bias (constant block index -> single DMA).
                pl.BlockSpec((k * k, cin, cout_p), lambda b, i: (0, 0, 0)),
                pl.BlockSpec((1, cout_p), lambda b, i: (0, 0)),
            ],
            out_specs=pl.BlockSpec(
                (tm, cout_p), lambda b, i: (b * num_row_tiles + i, 0)),
        ),
        compiler_params=pltpu.CompilerParams(**params),
        cost_estimate=cost,
    )(x_nhwc, w_kk, b_mat)

    out = out2d.reshape(n, hout_pad, wout, cout_p)[:, :hout, :, :cout]
    return jnp.transpose(out, (0, 3, 1, 2))                    # NHWC -> NCHW


if __name__ == "__main__":
    # Small shapes consistent with the module's forward.
    batch, in_channels, out_channels = 2, 4, 8
    kernel_size, stride, spatial = 3, 1, 16

    key = jax.random.PRNGKey(0)
    kx, kw, kb = jax.random.split(key, 3)

    x = jax.random.normal(kx, (batch, in_channels, spatial, spatial),
                          jnp.float32)
    # Deterministic synthetic Conv2d parameters: (Cout, Cin, K, K), (Cout,).
    fan_in = in_channels * kernel_size * kernel_size
    bound = 1.0 / np.sqrt(fan_in)
    weight = jax.random.uniform(
        kw, (out_channels, in_channels, kernel_size, kernel_size),
        jnp.float32, -bound, bound)
    bias = jax.random.uniform(kb, (out_channels,), jnp.float32, -bound, bound)

    out = jax.block_until_ready(new_conv_forward(x, weight, bias, stride))

    # Reference: reflect-pad + VALID conv in plain JAX/XLA.
    pad = kernel_size // 2
    xp = jnp.pad(x, ((0, 0), (0, 0), (pad, pad), (pad, pad)), mode="reflect")
    ref = jax.lax.conv_general_dilated(
        xp, weight, window_strides=(stride, stride), padding="VALID",
        dimension_numbers=("NCHW", "OIHW", "NCHW")) + bias.reshape(1, -1, 1, 1)
    ref = jax.block_until_ready(ref)

    assert out.shape == ref.shape, (out.shape, ref.shape)
    np.testing.assert_allclose(np.asarray(out), np.asarray(ref),
                               rtol=1e-4, atol=1e-4)
    print("KERNEL_OK")
</pallas_src>

<mosaic_0001>
module attributes {stable_mosaic.version = 11 : i64} {
  func.func @kernel(%arg0: i32, %arg1: i32, %arg2: memref<1x18x18x4xf32, #tpu.memory_space<vmem>>, %arg3: memref<9x4x128xf32, #tpu.memory_space<vmem>>, %arg4: memref<1x128xf32, #tpu.memory_space<vmem>>, %arg5: memref<256x128xf32, #tpu.memory_space<vmem>>) attributes {dimension_semantics = [#tpu.dimension_semantics<parallel>, #tpu.dimension_semantics<parallel>], iteration_bounds = array<i64: 2, 1>, scalar_prefetch = 0 : i64, scratch_operands = 0 : i64, tpu.core_type = #tpu.core_type<tc>, window_params = [{transform_indices = @transform_0, window_bounds = array<i64: 1, 18, 18, 4>}, {pipeline_mode = #tpu.pipeline_mode<synchronous>, transform_indices = @transform_1, window_bounds = array<i64: 9, 4, 128>}, {pipeline_mode = #tpu.pipeline_mode<synchronous>, transform_indices = @transform_2, window_bounds = array<i64: 1, 128>}, {transform_indices = @transform_3, window_bounds = array<i64: 256, 128>}]} {
    %c16_i32 = arith.constant 16 : i32
    %0 = arith.muli %arg1, %c16_i32 : i32
    %1 = tpu.assume_multiple %0, 8 : i32
    %cst = arith.constant 0.000000e+00 : f32
    %2 = vector.broadcast %cst : f32 to vector<256x128xf32>
    %c0_i32 = arith.constant 0 : i32
    %3 = arith.addi %1, %c0_i32 : i32
    %c0 = arith.constant 0 : index
    %4 = arith.index_cast %3 : i32 to index
    %c0_0 = arith.constant 0 : index
    %c0_1 = arith.constant 0 : index
    %5 = vector.load %arg2[%c0, %4, %c0_0, %c0_1] : memref<1x18x18x4xf32, #tpu.memory_space<vmem>>, vector<1x16x16x4xf32>
    %6 = vector.shape_cast %5 : vector<1x16x16x4xf32> to vector<16x16x4xf32>
    %7 = vector.shape_cast %6 : vector<16x16x4xf32> to vector<256x4xf32>
    %c0_2 = arith.constant 0 : index
    %c0_3 = arith.constant 0 : index
    %c0_4 = arith.constant 0 : index
    %8 = vector.load %arg3[%c0_2, %c0_3, %c0_4] : memref<9x4x128xf32, #tpu.memory_space<vmem>>, vector<1x4x128xf32>
    %9 = vector.shape_cast %8 : vector<1x4x128xf32> to vector<4x128xf32>
    %cst_5 = arith.constant dense<0.000000e+00> : vector<256x128xf32>
    %10 = tpu.matmul %7, %9, %cst_5 {dimension_numbers = #tpu.dot_dimension_numbers<[1], [0], [0], [1], [0, 0, 1, 1], [], []>} : vector<256x4xf32>, vector<4x128xf32>, vector<256x128xf32> -> vector<256x128xf32>
    %11 = arith.addf %2, %10 : vector<256x128xf32>
    %c0_6 = arith.constant 0 : index
    %12 = arith.index_cast %3 : i32 to index
    %c1 = arith.constant 1 : index
    %c0_7 = arith.constant 0 : index
    %13 = vector.load %arg2[%c0_6, %12, %c1, %c0_7] : memref<1x18x18x4xf32, #tpu.memory_space<vmem>>, vector<1x16x16x4xf32>
    %14 = vector.shape_cast %13 : vector<1x16x16x4xf32> to vector<16x16x4xf32>
    %15 = vector.shape_cast %14 : vector<16x16x4xf32> to vector<256x4xf32>
    %c1_8 = arith.constant 1 : index
    %c0_9 = arith.constant 0 : index
    %c0_10 = arith.constant 0 : index
    %16 = vector.load %arg3[%c1_8, %c0_9, %c0_10] : memref<9x4x128xf32, #tpu.memory_space<vmem>>, vector<1x4x128xf32>
    %17 = vector.shape_cast %16 : vector<1x4x128xf32> to vector<4x128xf32>
    %cst_11 = arith.constant dense<0.000000e+00> : vector<256x128xf32>
    %18 = tpu.matmul %15, %17, %cst_11 {dimension_numbers = #tpu.dot_dimension_numbers<[1], [0], [0], [1], [0, 0, 1, 1], [], []>} : vector<256x4xf32>, vector<4x128xf32>, vector<256x128xf32> -> vector<256x128xf32>
    %19 = arith.addf %11, %18 : vector<256x128xf32>
    %c0_12 = arith.constant 0 : index
    %20 = arith.index_cast %3 : i32 to index
    %c2 = arith.constant 2 : index
    %c0_13 = arith.constant 0 : index
    %21 = vector.load %arg2[%c0_12, %20, %c2, %c0_13] : memref<1x18x18x4xf32, #tpu.memory_space<vmem>>, vector<1x16x16x4xf32>
    %22 = vector.shape_cast %21 : vector<1x16x16x4xf32> to vector<16x16x4xf32>
    %23 = vector.shape_cast %22 : vector<16x16x4xf32> to vector<256x4xf32>
    %c2_14 = arith.constant 2 : index
    %c0_15 = arith.constant 0 : index
    %c0_16 = arith.constant 0 : index
    %24 = vector.load %arg3[%c2_14, %c0_15, %c0_16] : memref<9x4x128xf32, #tpu.memory_space<vmem>>, vector<1x4x128xf32>
    %25 = vector.shape_cast %24 : vector<1x4x128xf32> to vector<4x128xf32>
    %cst_17 = arith.constant dense<0.000000e+00> : vector<256x128xf32>
    %26 = tpu.matmul %23, %25, %cst_17 {dimension_numbers = #tpu.dot_dimension_numbers<[1], [0], [0], [1], [0, 0, 1, 1], [], []>} : vector<256x4xf32>, vector<4x128xf32>, vector<256x128xf32> -> vector<256x128xf32>
    %27 = arith.addf %19, %26 : vector<256x128xf32>
    %c1_i32 = arith.constant 1 : i32
    %28 = arith.addi %1, %c1_i32 : i32
    %c0_18 = arith.constant 0 : index
    %29 = arith.index_cast %28 : i32 to index
    %c0_19 = arith.constant 0 : index
    %c0_20 = arith.constant 0 : index
    %30 = vector.load %arg2[%c0_18, %29, %c0_19, %c0_20] : memref<1x18x18x4xf32, #tpu.memory_space<vmem>>, vector<1x16x16x4xf32>
    %31 = vector.shape_cast %30 : vector<1x16x16x4xf32> to vector<16x16x4xf32>
    %32 = vector.shape_cast %31 : vector<16x16x4xf32> to vector<256x4xf32>
    %c3 = arith.constant 3 : index
    %c0_21 = arith.constant 0 : index
    %c0_22 = arith.constant 0 : index
    %33 = vector.load %arg3[%c3, %c0_21, %c0_22] : memref<9x4x128xf32, #tpu.memory_space<vmem>>, vector<1x4x128xf32>
    %34 = vector.shape_cast %33 : vector<1x4x128xf32> to vector<4x128xf32>
    %cst_23 = arith.constant dense<0.000000e+00> : vector<256x128xf32>
    %35 = tpu.matmul %32, %34, %cst_23 {dimension_numbers = #tpu.dot_dimension_numbers<[1], [0], [0], [1], [0, 0, 1, 1], [], []>} : vector<256x4xf32>, vector<4x128xf32>, vector<256x128xf32> -> vector<256x128xf32>
    %36 = arith.addf %27, %35 : vector<256x128xf32>
    %c0_24 = arith.constant 0 : index
    %37 = arith.index_cast %28 : i32 to index
    %c1_25 = arith.constant 1 : index
    %c0_26 = arith.constant 0 : index
    %38 = vector.load %arg2[%c0_24, %37, %c1_25, %c0_26] : memref<1x18x18x4xf32, #tpu.memory_space<vmem>>, vector<1x16x16x4xf32>
    %39 = vector.shape_cast %38 : vector<1x16x16x4xf32> to vector<16x16x4xf32>
    %40 = vector.shape_cast %39 : vector<16x16x4xf32> to vector<256x4xf32>
    %c4 = arith.constant 4 : index
    %c0_27 = arith.constant 0 : index
    %c0_28 = arith.constant 0 : index
    %41 = vector.load %arg3[%c4, %c0_27, %c0_28] : memref<9x4x128xf32, #tpu.memory_space<vmem>>, vector<1x4x128xf32>
    %42 = vector.shape_cast %41 : vector<1x4x128xf32> to vector<4x128xf32>
    %cst_29 = arith.constant dense<0.000000e+00> : vector<256x128xf32>
    %43 = tpu.matmul %40, %42, %cst_29 {dimension_numbers = #tpu.dot_dimension_numbers<[1], [0], [0], [1], [0, 0, 1, 1], [], []>} : vector<256x4xf32>, vector<4x128xf32>, vector<256x128xf32> -> vector<256x128xf32>
    %44 = arith.addf %36, %43 : vector<256x128xf32>
    %c0_30 = arith.constant 0 : index
    %45 = arith.index_cast %28 : i32 to index
    %c2_31 = arith.constant 2 : index
    %c0_32 = arith.constant 0 : index
    %46 = vector.load %arg2[%c0_30, %45, %c2_31, %c0_32] : memref<1x18x18x4xf32, #tpu.memory_space<vmem>>, vector<1x16x16x4xf32>
    %47 = vector.shape_cast %46 : vector<1x16x16x4xf32> to vector<16x16x4xf32>
    %48 = vector.shape_cast %47 : vector<16x16x4xf32> to vector<256x4xf32>
    %c5 = arith.constant 5 : index
    %c0_33 = arith.constant 0 : index
    %c0_34 = arith.constant 0 : index
    %49 = vector.load %arg3[%c5, %c0_33, %c0_34] : memref<9x4x128xf32, #tpu.memory_space<vmem>>, vector<1x4x128xf32>
    %50 = vector.shape_cast %49 : vector<1x4x128xf32> to vector<4x128xf32>
    %cst_35 = arith.constant dense<0.000000e+00> : vector<256x128xf32>
    %51 = tpu.matmul %48, %50, %cst_35 {dimension_numbers = #tpu.dot_dimension_numbers<[1], [0], [0], [1], [0, 0, 1, 1], [], []>} : vector<256x4xf32>, vector<4x128xf32>, vector<256x128xf32> -> vector<256x128xf32>
    %52 = arith.addf %44, %51 : vector<256x128xf32>
    %c2_i32 = arith.constant 2 : i32
    %53 = arith.addi %1, %c2_i32 : i32
    %c0_36 = arith.constant 0 : index
    %54 = arith.index_cast %53 : i32 to index
    %c0_37 = arith.constant 0 : index
    %c0_38 = arith.constant 0 : index
    %55 = vector.load %arg2[%c0_36, %54, %c0_37, %c0_38] : memref<1x18x18x4xf32, #tpu.memory_space<vmem>>, vector<1x16x16x4xf32>
    %56 = vector.shape_cast %55 : vector<1x16x16x4xf32> to vector<16x16x4xf32>
    %57 = vector.shape_cast %56 : vector<16x16x4xf32> to vector<256x4xf32>
    %c6 = arith.constant 6 : index
    %c0_39 = arith.constant 0 : index
    %c0_40 = arith.constant 0 : index
    %58 = vector.load %arg3[%c6, %c0_39, %c0_40] : memref<9x4x128xf32, #tpu.memory_space<vmem>>, vector<1x4x128xf32>
    %59 = vector.shape_cast %58 : vector<1x4x128xf32> to vector<4x128xf32>
    %cst_41 = arith.constant dense<0.000000e+00> : vector<256x128xf32>
    %60 = tpu.matmul %57, %59, %cst_41 {dimension_numbers = #tpu.dot_dimension_numbers<[1], [0], [0], [1], [0, 0, 1, 1], [], []>} : vector<256x4xf32>, vector<4x128xf32>, vector<256x128xf32> -> vector<256x128xf32>
    %61 = arith.addf %52, %60 : vector<256x128xf32>
    %c0_42 = arith.constant 0 : index
    %62 = arith.index_cast %53 : i32 to index
    %c1_43 = arith.constant 1 : index
    %c0_44 = arith.constant 0 : index
    %63 = vector.load %arg2[%c0_42, %62, %c1_43, %c0_44] : memref<1x18x18x4xf32, #tpu.memory_space<vmem>>, vector<1x16x16x4xf32>
    %64 = vector.shape_cast %63 : vector<1x16x16x4xf32> to vector<16x16x4xf32>
    %65 = vector.shape_cast %64 : vector<16x16x4xf32> to vector<256x4xf32>
    %c7 = arith.constant 7 : index
    %c0_45 = arith.constant 0 : index
    %c0_46 = arith.constant 0 : index
    %66 = vector.load %arg3[%c7, %c0_45, %c0_46] : memref<9x4x128xf32, #tpu.memory_space<vmem>>, vector<1x4x128xf32>
    %67 = vector.shape_cast %66 : vector<1x4x128xf32> to vector<4x128xf32>
    %cst_47 = arith.constant dense<0.000000e+00> : vector<256x128xf32>
    %68 = tpu.matmul %65, %67, %cst_47 {dimension_numbers = #tpu.dot_dimension_numbers<[1], [0], [0], [1], [0, 0, 1, 1], [], []>} : vector<256x4xf32>, vector<4x128xf32>, vector<256x128xf32> -> vector<256x128xf32>
    %69 = arith.addf %61, %68 : vector<256x128xf32>
    %c0_48 = arith.constant 0 : index
    %70 = arith.index_cast %53 : i32 to index
    %c2_49 = arith.constant 2 : index
    %c0_50 = arith.constant 0 : index
    %71 = vector.load %arg2[%c0_48, %70, %c2_49, %c0_50] : memref<1x18x18x4xf32, #tpu.memory_space<vmem>>, vector<1x16x16x4xf32>
    %72 = vector.shape_cast %71 : vector<1x16x16x4xf32> to vector<16x16x4xf32>
    %73 = vector.shape_cast %72 : vector<16x16x4xf32> to vector<256x4xf32>
    %c8 = arith.constant 8 : index
    %c0_51 = arith.constant 0 : index
    %c0_52 = arith.constant 0 : index
    %74 = vector.load %arg3[%c8, %c0_51, %c0_52] : memref<9x4x128xf32, #tpu.memory_space<vmem>>, vector<1x4x128xf32>
    %75 = vector.shape_cast %74 : vector<1x4x128xf32> to vector<4x128xf32>
    %cst_53 = arith.constant dense<0.000000e+00> : vector<256x128xf32>
    %76 = tpu.matmul %73, %75, %cst_53 {dimension_numbers = #tpu.dot_dimension_numbers<[1], [0], [0], [1], [0, 0, 1, 1], [], []>} : vector<256x4xf32>, vector<4x128xf32>, vector<256x128xf32> -> vector<256x128xf32>
    %77 = arith.addf %69, %76 : vector<256x128xf32>
    %c0_54 = arith.constant 0 : index
    %c0_55 = arith.constant 0 : index
    %78 = vector.load %arg4[%c0_54, %c0_55] : memref<1x128xf32, #tpu.memory_space<vmem>>, vector<1x128xf32>
    %79 = vector.broadcast %78 : vector<1x128xf32> to vector<256x128xf32>
    %80 = arith.addf %77, %79 : vector<256x128xf32>
    %c0_56 = arith.constant 0 : index
    %c0_57 = arith.constant 0 : index
    %81 = vector.load %arg5[%c0_56, %c0_57] : memref<256x128xf32, #tpu.memory_space<vmem>>, vector<256x128xf32>
    tpu.vector_store %arg5[%c0_56, %c0_57], %80 {strides = array<i32>} : memref<256x128xf32, #tpu.memory_space<vmem>>, vector<256x128xf32>,
    return
  }
  func.func @transform_0(%arg0: i32, %arg1: i32) -> (i32, i32, i32, i32) {
    %c0_i32 = arith.constant 0 : i32
    %c0_i32_0 = arith.constant 0 : i32
    %c0_i32_1 = arith.constant 0 : i32
    %c0_i32_2 = arith.constant 0 : i32
    return %arg0, %c0_i32, %c0_i32_0, %c0_i32_1 : i32, i32, i32, i32
  }
  func.func @transform_1(%arg0: i32, %arg1: i32) -> (i32, i32, i32) {
    %c0_i32 = arith.constant 0 : i32
    %c0_i32_0 = arith.constant 0 : i32
    %c0_i32_1 = arith.constant 0 : i32
    %c0_i32_2 = arith.constant 0 : i32
    return %c0_i32, %c0_i32_0, %c0_i32_1 : i32, i32, i32
  }
  func.func @transform_2(%arg0: i32, %arg1: i32) -> (i32, i32) {
    %c0_i32 = arith.constant 0 : i32
    %c0_i32_0 = arith.constant 0 : i32
    %c0_i32_1 = arith.constant 0 : i32
    return %c0_i32, %c0_i32_0 : i32, i32
  }
  func.func @transform_3(%arg0: i32, %arg1: i32) -> (i32, i32) {
    %c1_i32 = arith.constant 1 : i32
    %0 = arith.muli %arg0, %c1_i32 : i32
    %1 = arith.addi %0, %arg1 : i32
    %c0_i32 = arith.constant 0 : i32
    %c0_i32_0 = arith.constant 0 : i32
    return %1, %c0_i32 : i32, i32
  }
}

</mosaic_0001>

<bundles_post_ra>
// kernel: tpu_custom_call.1
= control target key start
LH: loop header
LB: loop body
LE: loop exit
PB: predicated region body
PF: predicated region fallthrough
CT: control target
= control target key end

     0   :  { %8 = vsyncpa [#allocation3], 0  ;;  %s6606_s0 = inlined_call_operand.vmem [shape: f32[2,18,18,4], index: 0, kind: input, shape index: {}]   ;;  %s6607_s1 = inlined_call_operand.vmem [shape: f32[9,4,128], index: 1, kind: input, shape index: {}]   ;;  %s6608_s2 = inlined_call_operand.vmem [shape: f32[1,128], index: 2, kind: input, shape index: {}]   ;;  %s6609_s3 = inlined_call_operand.hbm [shape: f32[512,128], index: 3, kind: output, shape index: {}]  }
   0x1   :  { %10 = vsyncpa [#allocation3 + $0x1], 0  ;;  %s5485_s12 = smov 0   ;;  %s5487_s13 = smov 0  }
   0x2   :  { %s5489_s14 = smov 0   ;;  %s5491_s15 = smov 0  }
   0x3   :  { %s5493_s16 = smov 0   ;;  %s5495_s17 = smov 0  }
   0x4 LB: > { %s3808_s18 = sadd.s32 4294967295, %s5460_s17   ;;  %s3809_s19 = sadd.s32 4294967294, %s5460_s17   ;;  %s5460_s17 = sphi %s5495_s17, %s16_s17   ;;  %s5456_s16 = sphi %s5493_s16, %s6725_s16   ;;  %s5452_s15 = sphi %s5491_s15, %s6724_s15   ;;  %s5448_s14 = sphi %s5489_s14, %s6723_s14   ;;  %s5444_s13 = sphi %s5487_s13, %s6722_s13   ;;  %s5440_s12 = sphi %s5485_s12, %s6721_s12  }
   0x5   : > { %s28_s20 = sadd.s32 1, %s5456_s16  ;;  %s105_s21 = sadd.s32 1, %s5448_s14 }
   0x6   : > { %p30_p0 = scmp.ge.s32.totalorder %s28_s20, 2  ;;  %p115_p1 = scmp.ne.s32.totalorder %s5448_s14, %s5444_s13 }
   0x7   : > { %p116_p2 = scmp.eq.s32.totalorder %s3808_s18, 1  ;;  %p121_p3 = scmp.ne.s32.totalorder %s5444_s13, %s5440_s12 }
   0x8   : > { %s6727_s20 = smov (%p30_p0, %s28_s20), 0  ;;  %p122_p5 = scmp.eq.s32.totalorder %s3809_s19, 1 }
   0x9   : > { %p5525_p4 = por %p116_p2, %p115_p1  ;;  %s102_s23 = ssub.s32 %s5456_s16, %s6727_s20 }
   0xa   : > { %p3812_p6 = scmp.ge.s32.totalorder %s5460_s17, 1  ;;  %p103_p7 = scmp.eq.s32.totalorder %s102_s23, 0 }
   0xb   : > { %p5532_p8 = por %p122_p5, %p121_p3  ;;  %p154_p9 = scmp.lt.s32.totalorder %s5460_s17, 3 }
   0xc   : > { %s5538_s25 = scalar_select %p103_p7, %s5448_s14, %s105_s21  }
   0xd   : > { %p155_p10 = pnand %p3812_p6, %p154_p9 }
   0xf   : > { %158 = sbr.rel (%p155_p10) target bundleno = 547 (0x223), region = 32 }
  0x16   : > { %v3815_v0 = vld [vmem:[%s6607_s1 + $0x4] sm:$0xf]  ;;  %vm352_vm0 = vcmask 1043456   ;;  %v5546_v1 = vld [vmem:[%s6607_s1 + $0x10] sm:$0xf]  ;;  %p178_p11 = scmp.lt.s32.totalorder %s5452_s15, 1 }
  0x17   : > { %4616 = vmatprep.subr.msk.mxu1 %vm352_vm0, %v3815_v0  ;;  %4816 = vmatprep.subr.msk.mxu0 %vm352_vm0, %v5546_v1  ;;  %v220_v2 = vld [vmem:[%s6607_s1] sm:$0xf]  ;;  %v4080_v3 = vld [vmem:[%s6607_s1 + $0x14] sm:$0xf]  ;;  %vm255_vm1 = vcmask 31744   ;;  %s175_s5 = sand.u32 1, %s5444_s13  }
  0x18   : > { %4617 = vmatpush3.msk.msra.mxu1 %vm352_vm0, %v3815_v0  ;;  %4817 = vmatpush3.msk.msra.mxu0 %vm352_vm0, %v5546_v1  ;;  %s179_s7 = scalar_select %p178_p11, %s5452_s15, 1  ;;  %v4146_v9 = vld [vmem:[%s6607_s1 + $0x18] sm:$0xf]  ;;  %v5586_v10 = vld [vmem:[%s6607_s1 + $0x8] sm:$0xf] }
  0x19   : > { %4666 = vmatprep.subr.msk.mxu1 %vm352_vm0, %v220_v2  ;;  %4866 = vmatprep.subr.msk.mxu0 %vm352_vm0, %v4080_v3  ;;  %v5705_v28 = vld [vmem:[%s6607_s1 + $0x1c] sm:$0xf]  ;;  %v5868_v61 = vld [vmem:[%s6607_s1 + $0xc] sm:$0xf]  ;;  %s3813_s6 = sshll.u32 %s175_s5, 8  ;;  %s4318_s10 = sshll.u32 %s5452_s15, 12 }
  0x1a   : > { %s5324_s8 = smul.u32 432, %s179_s7  ;;  %s6484_s9 = scalar_lea.vmem [#allocation2], %s3813_s6 }
  0x1b   : > { %s6551_s21 = scalar_lea.hbm %s6609_s3, %s4318_s10  ;;  %s6560_s15 = scalar_lea.sflag [#allocation3], %s175_s5 }
  0x1c   : > { %s5567_s11 = scalar_lea.vmem %s6606_s0, %s5324_s8  ;;  %s5462_s26 = smov [#allocation2]  }
  0x1d   : > { %v221_v4 = vld [vmem:[%s5567_s11 + $0x1] sm:$0xff]  ;;  %v3982_v5 = vld [vmem:[%s5567_s11 + $0x19] sm:$0xff]  ;;  %v222_v6 = vld [vmem:[%s5567_s11 + $0x9] sm:$0xff]  ;;  %s5386_s27 = sshll.u32 %s5462_s26, 4  ;;  %s5387_s27 = int_to_ptr.vmem [resolvable:$false] %s5386_s27 }
  0x1e   : > { %4618 = vmatprep.mubr.msk.f32.mxu1 %vm255_vm1, %v221_v4  ;;  %4818 = vmatprep.mubr.msk.f32.mxu0 %vm255_vm1, %v3982_v5  ;;  %v3983_v7 = vld [vmem:[%s5567_s11 + $0x21] sm:$0xff]  ;;  %v5576_v8 = vld [vmem:[%s5567_s11 + $0x31] sm:$0xff]  ;;  %v5591_v11 = vld [vmem:[%s5567_s11 + $0x39] sm:$0xff]  ;;  %s5388_s28 = scalar_lea.vmem %s5387_s27, 8192 }
  0x1f   : > { %4619 = vmatmul.mubr.msk.f32.vlgmr.msra.gmra.mrb[0].mxu1 %vm255_vm1, %v222_v6  ;;  %4819 = vmatmul.mubr.msk.f32.vlgmr.msra.gmra.mrb[0].mxu0 %vm255_vm1, %v3983_v7  ;;  %v5597_v12 = vld [vmem:[%s5567_s11 + $0x49] sm:$0xff]  ;;  %v5610_v13 = vld [vmem:[%s5567_s11 + $0x51] sm:$0xff]  ;;  %v5613_v14 = vld [vmem:[%s5567_s11 + $0x61] sm:$0xff] }
  0x20   : > { %4667 = vmatpush3.msk.msra.mxu1 %vm352_vm0, %v220_v2  ;;  %4867 = vmatpush3.msk.msra.mxu0 %vm352_vm0, %v4080_v3  ;;  %v5624_v15 = vld [vmem:[%s5567_s11 + $0x69] sm:$0xff]  ;;  %v5627_v16 = vld [vmem:[%s5567_s11 + $0x79] sm:$0xff]  ;;  %v5638_v17 = vld [vmem:[%s5567_s11 + $0x81] sm:$0xff] }
  0x21   : > { %4621 = vmatprep.mubr.msk.f32.mxu1 %vm255_vm1, %v3982_v5  ;;  %4821 = vmatprep.mubr.msk.f32.mxu0 %vm255_vm1, %v5576_v8  ;;  %v5641_v18 = vld [vmem:[%s5567_s11 + $0x91] sm:$0xff]  ;;  %v5652_v19 = vld [vmem:[%s5567_s11 + $0x99] sm:$0xff]  ;;  %v5655_v20 = vld [vmem:[%s5567_s11 + $0xa9] sm:$0xff] }
  0x22   : > { %4916 = vmatprep.subr.msk.mxu0 %vm352_vm0, %v4146_v9  ;;  %4716 = vmatprep.subr.msk.mxu1 %vm352_vm0, %v5586_v10  ;;  %v5666_v21 = vld [vmem:[%s5567_s11 + $0xb1] sm:$0xff]  ;;  %v5669_v22 = vld [vmem:[%s5567_s11 + $0xc1] sm:$0xff]  ;;  %v5680_v23 = vld [vmem:[%s5567_s11 + $0xc9] sm:$0xff] }
  0x23   : > { %4622 = vmatmul.mubr.msk.f32.gmra.mrb[2].mxu1 %vm255_vm1, %v3983_v7  ;;  %4822 = vmatmul.mubr.msk.f32.gmra.mrb[2].mxu0 %vm255_vm1, %v5591_v11  ;;  %v5683_v24 = vld [vmem:[%s5567_s11 + $0x1a] sm:$0xff]  ;;  %v5694_v25 = vld [vmem:[%s5567_s11 + $0x22] sm:$0xff]  ;;  %v5700_v27 = vld [vmem:[%s5567_s11 + $0x32] sm:$0xff] }
  0x24   : > { %4624 = vmatprep.mubr.msk.f32.mxu1 %vm255_vm1, %v5576_v8  ;;  %4824 = vmatprep.mubr.msk.f32.mxu0 %vm255_vm1, %v5597_v12  ;;  %v5697_v26 = vld [vmem:[%s5567_s11 + $0xd9] sm:$0xff]  ;;  %v5715_v29 = vld [vmem:[%s5567_s11 + $0xe1] sm:$0xff]  ;;  %v5723_v31 = vld [vmem:[%s5567_s11 + $0xf1] sm:$0xff] }
  0x25   : > { %6657 = vst [vmem:[#allocation5_spill] sm:$0xff] %v5715_v29  ;;  %v5718_v30 = vld [vmem:[%s5567_s11 + $0x3a] sm:$0xff]  ;;  %6658 = vst [vmem:[#allocation6_spill] sm:$0xff] %v5723_v31  ;;  %v5726_v32 = vld [vmem:[%s5567_s11 + $0x4a] sm:$0xff] }
  0x26   : > { %v5739_v33 = vld [vmem:[%s5567_s11 + $0xf9] sm:$0xff]  ;;  %v5745_v35 = vld [vmem:[%s5567_s11 + $0x109] sm:$0xff]  ;;  %v5759_v37 = vld [vmem:[%s5567_s11 + $0x111] sm:$0xff] }
  0x27   : > { %4625 = vmatmul.mubr.msk.f32.gmra.mrb[4].mxu1 %vm255_vm1, %v5591_v11  ;;  %4825 = vmatmul.mubr.msk.f32.gmra.mrb[4].mxu0 %vm255_vm1, %v5610_v13  ;;  %6659 = vst [vmem:[#allocation7_spill] sm:$0xff] %v5739_v33  ;;  %v5742_v34 = vld [vmem:[%s5567_s11 + $0x52] sm:$0xff]  ;;  %6660 = vst [vmem:[#allocation8_spill] sm:$0xff] %v5745_v35  ;;  %v5748_v36 = vld [vmem:[%s5567_s11 + $0x62] sm:$0xff] }
  0x28   : > { %4627 = vmatprep.mubr.msk.f32.mxu1 %vm255_vm1, %v5597_v12  ;;  %4827 = vmatprep.mubr.msk.f32.mxu0 %vm255_vm1, %v5613_v14  ;;  %6661 = vst [vmem:[#allocation9_spill] sm:$0xff] %v5759_v37  ;;  %v5762_v38 = vld [vmem:[%s5567_s11 + $0x6a] sm:$0xff]  ;;  %v5765_v39 = vld [vmem:[%s5567_s11 + $0x121] sm:$0xff]  ;;  %v5785_v43 = vld [vmem:[%s5567_s11 + $0x139] sm:$0xff] }
  0x29   : > { %6662 = vst [vmem:[#allocation10_spill] sm:$0xff] %v5765_v39  ;;  %v5768_v40 = vld [vmem:[%s5567_s11 + $0x7a] sm:$0xff]  ;;  %v5779_v41 = vld [vmem:[%s5567_s11 + $0x129] sm:$0xff]  ;;  %6664 = vst [vmem:[#allocation12_spill] sm:$0xff] %v5785_v43 }
  0x2a   : > { %6663 = vst [vmem:[#allocation11_spill] sm:$0xff] %v5779_v41  ;;  %v5782_v42 = vld [vmem:[%s5567_s11 + $0x82] sm:$0xff]  ;;  %v5788_v44 = vld [vmem:[%s5567_s11 + $0x92] sm:$0xff]  ;;  %v5802_v46 = vld [vmem:[%s5567_s11 + $0x9a] sm:$0xff] }
  0x2b   : > { %4628 = vmatmul.mubr.msk.f32.gmra.mrb[6].mxu1 %vm255_vm1, %v5610_v13  ;;  %4828 = vmatmul.mubr.msk.f32.gmra.mrb[6].mxu0 %vm255_vm1, %v5624_v15  ;;  %v5799_v45 = vld [vmem:[%s5567_s11 + $0x141] sm:$0xff]  ;;  %v5805_v47 = vld [vmem:[%s5567_s11 + $0x151] sm:$0xff]  ;;  %v5819_v49 = vld [vmem:[%s5567_s11 + $0x159] sm:$0xff] }
  0x2c   : > { %4630 = vmatprep.mubr.msk.f32.mxu1 %vm255_vm1, %v5613_v14  ;;  %4830 = vmatprep.mubr.msk.f32.mxu0 %vm255_vm1, %v5627_v16  ;;  %6665 = vst [vmem:[#allocation13_spill] sm:$0xff] %v5799_v45  ;;  %6666 = vst [vmem:[#allocation14_spill] sm:$0xff] %v5805_v47  ;;  %v5808_v48 = vld [vmem:[%s5567_s11 + $0xaa] sm:$0xff]  ;;  %v5822_v50 = vld [vmem:[%s5567_s11 + $0xb2] sm:$0xff] }
  0x2d   : > { %6667 = vst [vmem:[#allocation15_spill] sm:$0xff] %v5819_v49  ;;  %v5825_v51 = vld [vmem:[%s5567_s11 + $0x169] sm:$0xff]  ;;  %v5839_v53 = vld [vmem:[%s5567_s11 + $0x171] sm:$0xff]  ;;  %v188_v55 = vld [vmem:[%s5567_s11] sm:$0xff] }
  0x2e   : > { %6668 = vst [vmem:[#allocation16_spill] sm:$0xff] %v5825_v51  ;;  %v5828_v52 = vld [vmem:[%s5567_s11 + $0xc2] sm:$0xff]  ;;  %6669 = vst [vmem:[#allocation17_spill] sm:$0xff] %v5839_v53  ;;  %v5842_v54 = vld [vmem:[%s5567_s11 + $0xca] sm:$0xff] }
  0x2f   : > { %4631 = vmatmul.mubr.msk.f32.gmra.mrb[8].mxu1 %vm255_vm1, %v5624_v15  ;;  %4831 = vmatmul.mubr.msk.f32.gmra.mrb[8].mxu0 %vm255_vm1, %v5638_v17  ;;  %v5846_v56 = vld [vmem:[%s5567_s11 + $0xda] sm:$0xff]  ;;  %v189_v57 = vld [vmem:[%s5567_s11 + $0x8] sm:$0xff]  ;;  %v5863_v60 = vld [vmem:[%s5567_s11 + $0xf2] sm:$0xff] }
  0x30   : > { %4633 = vmatprep.mubr.msk.f32.mxu1 %vm255_vm1, %v5627_v16  ;;  %4833 = vmatprep.mubr.msk.f32.mxu0 %vm255_vm1, %v5641_v18  ;;  %v5857_v58 = vld [vmem:[%s5567_s11 + $0xe2] sm:$0xff]  ;;  %v5860_v59 = vld [vmem:[%s5567_s11 + $0x18] sm:$0xff]  ;;  %v5886_v0 = vld [vmem:[%s5567_s11 + $0x30] sm:$0xff] }
  0x31   : > { %6670 = vst [vmem:[#allocation18_spill] sm:$0xff] %v5860_v59  ;;  %v5878_v62 = vld [vmem:[%s5567_s11 + $0x20] sm:$0xff]  ;;  %6672 = vst [vmem:[#allocation20_spill] sm:$0xff] %v5886_v0  ;;  %v5889_v2 = vld [vmem:[%s5567_s11 + $0x10a] sm:$0xff] }
  0x32   : > { %6671 = vst [vmem:[#allocation19_spill] sm:$0xff] %v5878_v62  ;;  %v5881_v63 = vld [vmem:[%s5567_s11 + $0xfa] sm:$0xff]  ;;  %v5905_v4 = vld [vmem:[%s5567_s11 + $0x112] sm:$0xff]  ;;  %v5908_v5 = vld [vmem:[%s5567_s11 + $0x48] sm:$0xff] }
  0x33   : > { %4634 = vmatmul.mubr.msk.f32.gmra.mrb[10].mxu1 %vm255_vm1, %v5638_v17  ;;  %4834 = vmatmul.mubr.msk.f32.gmra.mrb[10].mxu0 %vm255_vm1, %v5652_v19  ;;  %v5902_v3 = vld [vmem:[%s5567_s11 + $0x38] sm:$0xff]  ;;  %6674 = vst [vmem:[#allocation22_spill] sm:$0xff] %v5908_v5  ;;  %v5911_v6 = vld [vmem:[%s5567_s11 + $0x122] sm:$0xff]  ;;  %v5922_v7 = vld [vmem:[%s5567_s11 + $0x50] sm:$0xff] }
  0x34   : > { %4636 = vmatprep.mubr.msk.f32.mxu1 %vm255_vm1, %v5641_v18  ;;  %4836 = vmatprep.mubr.msk.f32.mxu0 %vm255_vm1, %v5655_v20  ;;  %6673 = vst [vmem:[#allocation21_spill] sm:$0xff] %v5902_v3  ;;  %6675 = vst [vmem:[#allocation23_spill] sm:$0xff] %v5922_v7 }
  0x37   : > { %4637 = vmatmul.mubr.msk.f32.gmra.mrb[12].mxu1 %vm255_vm1, %v5652_v19  ;;  %4837 = vmatmul.mubr.msk.f32.gmra.mrb[12].mxu0 %vm255_vm1, %v5666_v21 }
  0x38   : > { %4639 = vmatprep.mubr.msk.f32.mxu1 %vm255_vm1, %v5655_v20  ;;  %4839 = vmatprep.mubr.msk.f32.mxu0 %vm255_vm1, %v5669_v22 }
  0x3b   : > { %4640 = vmatmul.mubr.msk.f32.gmra.mrb[14].mxu1 %vm255_vm1, %v5666_v21  ;;  %4840 = vmatmul.mubr.msk.f32.gmra.mrb[14].mxu0 %vm255_vm1, %v5680_v23 }
  0x3c   : > { %4642 = vmatprep.mubr.msk.f32.mxu1 %vm255_vm1, %v5669_v22  ;;  %4868 = vmatprep.mubr.msk.f32.mxu0 %vm255_vm1, %v5683_v24 }
  0x3f   : > { %4643 = vmatmul.mubr.msk.f32.gmra.mrb[16].mxu1 %vm255_vm1, %v5680_v23  ;;  %4869 = vmatmul.mubr.msk.f32.vlgmr.msra.gmra.mrb[0].mxu0 %vm255_vm1, %v5694_v25 }
  0x40   : > { %4917 = vmatpush3.msk.msra.mxu0 %vm352_vm0, %v4146_v9  ;;  %4645 = vmatprep.mubr.msk.f32.mxu1 %vm255_vm1, %v5697_v26  ;;  %v5925_v9 = vld [vmem:[%s5567_s11 + $0x12a] sm:$0xff] }
  0x41   : > { %4871 = vmatprep.mubr.msk.f32.mxu0 %vm255_vm1, %v5700_v27  ;;  %4966 = vmatprep.subr.msk.mxu0 %vm352_vm0, %v5705_v28 }
  0x43   : > { %4646 = vmatmul.mubr.msk.f32.gmra.mrb[18].mxu1 %vm255_vm1, %v5715_v29  ;;  %4872 = vmatmul.mubr.msk.f32.gmra.mrb[2].mxu0 %vm255_vm1, %v5718_v30  ;;  %v6022_v29 = vld [vmem:[%s5567_s11 + $0xd8] sm:$0xff] }
  0x44   : > { %4648 = vmatprep.mubr.msk.f32.mxu1 %vm255_vm1, %v5723_v31  ;;  %4874 = vmatprep.mubr.msk.f32.mxu0 %vm255_vm1, %v5726_v32  ;;  %v6005_v31 = vld [vmem:[%s5567_s11 + $0x18a] sm:$0xff] }
  0x45   : > { %6686 = vst [vmem:[#allocation34_spill] sm:$0xff] %v6005_v31 }
  0x47   : > { %4649 = vmatmul.mubr.msk.f32.gmra.mrb[20].mxu1 %vm255_vm1, %v5739_v33  ;;  %4875 = vmatmul.mubr.msk.f32.gmra.mrb[4].mxu0 %vm255_vm1, %v5742_v34  ;;  %v5991_v33 = vld [vmem:[%s5567_s11 + $0x182] sm:$0xff] }
  0x48   : > { %4651 = vmatprep.mubr.msk.f32.mxu1 %vm255_vm1, %v5745_v35  ;;  %4877 = vmatprep.mubr.msk.f32.mxu0 %vm255_vm1, %v5748_v36  ;;  %v5988_v35 = vld [vmem:[%s5567_s11 + $0xa8] sm:$0xff]  ;;  %6684 = vst [vmem:[#allocation32_spill] sm:$0xff] %v5991_v33 }
  0x49   : > { %6683 = vst [vmem:[#allocation31_spill] sm:$0xff] %v5988_v35 }
  0x4b   : > { %4652 = vmatmul.mubr.msk.f32.gmra.mrb[22].mxu1 %vm255_vm1, %v5759_v37  ;;  %4878 = vmatmul.mubr.msk.f32.gmra.mrb[6].mxu0 %vm255_vm1, %v5762_v38  ;;  %v5985_v37 = vld [vmem:[%s5567_s11 + $0x172] sm:$0xff] }
  0x4c   : > { %4654 = vmatprep.mubr.msk.f32.mxu1 %vm255_vm1, %v5765_v39  ;;  %4880 = vmatprep.mubr.msk.f32.mxu0 %vm255_vm1, %v5768_v40  ;;  %v5982_v39 = vld [vmem:[%s5567_s11 + $0x98] sm:$0xff]  ;;  %6682 = vst [vmem:[#allocation30_spill] sm:$0xff] %v5985_v37 }
  0x4d   : > { %6681 = vst [vmem:[#allocation29_spill] sm:$0xff] %v5982_v39 }
  0x4f   : > { %4655 = vmatmul.mubr.msk.f32.gmra.mrb[24].mxu1 %vm255_vm1, %v5779_v41  ;;  %4881 = vmatmul.mubr.msk.f32.gmra.mrb[8].mxu0 %vm255_vm1, %v5782_v42  ;;  %v5971_v41 = vld [vmem:[%s5567_s11 + $0x16a] sm:$0xff] }
  0x50   : > { %4657 = vmatprep.mubr.msk.f32.mxu1 %vm255_vm1, %v5785_v43  ;;  %4883 = vmatprep.mubr.msk.f32.mxu0 %vm255_vm1, %v5788_v44  ;;  %v5968_v43 = vld [vmem:[%s5567_s11 + $0x90] sm:$0xff] }
  0x51   : > { %6680 = vst [vmem:[#allocation28_spill] sm:$0xff] %v5968_v43 }
  0x53   : > { %4658 = vmatmul.mubr.msk.f32.gmra.mrb[26].mxu1 %vm255_vm1, %v5799_v45  ;;  %4884 = vmatmul.mubr.msk.f32.gmra.mrb[10].mxu0 %vm255_vm1, %v5802_v46  ;;  %v5965_v45 = vld [vmem:[%s5567_s11 + $0x15a] sm:$0xff] }
  0x54   : > { %4660 = vmatprep.mubr.msk.f32.mxu1 %vm255_vm1, %v5805_v47  ;;  %4886 = vmatprep.mubr.msk.f32.mxu0 %vm255_vm1, %v5808_v48  ;;  %v5962_v47 = vld [vmem:[%s5567_s11 + $0x80] sm:$0xff] }
  0x55   : > { %6679 = vst [vmem:[#allocation27_spill] sm:$0xff] %v5962_v47 }
  0x57   : > { %4661 = vmatmul.mubr.msk.f32.gmra.mrb[28].mxu1 %vm255_vm1, %v5819_v49  ;;  %4887 = vmatmul.mubr.msk.f32.gmra.mrb[12].mxu0 %vm255_vm1, %v5822_v50  ;;  %v5951_v49 = vld [vmem:[%s5567_s11 + $0x152] sm:$0xff] }
  0x58   : > { %4663 = vmatprep.mubr.msk.f32.mxu1 %vm255_vm1, %v5825_v51  ;;  %4889 = vmatprep.mubr.msk.f32.mxu0 %vm255_vm1, %v5828_v52  ;;  %v5948_v51 = vld [vmem:[%s5567_s11 + $0x78] sm:$0xff] }
  0x59   : > { %6678 = vst [vmem:[#allocation26_spill] sm:$0xff] %v5948_v51 }
  0x5b   : > { %4664 = vmatmul.mubr.msk.f32.gmra.mrb[30].mxu1 %vm255_vm1, %v5839_v53  ;;  %4890 = vmatmul.mubr.msk.f32.gmra.mrb[14].mxu0 %vm255_vm1, %v5842_v54  ;;  %v5945_v53 = vld [vmem:[%s5567_s11 + $0x142] sm:$0xff] }
  0x5c   : > { %4668 = vmatprep.mubr.msk.f32.mxu1 %vm255_vm1, %v188_v55  ;;  %4892 = vmatprep.mubr.msk.f32.mxu0 %vm255_vm1, %v5846_v56  ;;  %v5931_v55 = vld [vmem:[%s5567_s11 + $0x13a] sm:$0xff] }
  0x5f   : > { %4669 = vmatmul.mubr.msk.f32.vlgmr.msra.gmra.mrb[0].mxu1 %vm255_vm1, %v189_v57  ;;  %4893 = vmatmul.mubr.msk.f32.gmra.mrb[16].mxu0 %vm255_vm1, %v5857_v58  ;;  %v5942_v57 = vld [vmem:[%s5567_s11 + $0x68] sm:$0xff] }
  0x60   : > { %4717 = vmatpush3.msk.msra.mxu1 %vm352_vm0, %v5586_v10  ;;  %4671 = vmatprep.mubr.msk.f32.mxu1 %vm255_vm1, %v5860_v59  ;;  %v5928_v10 = vld [vmem:[%s5567_s11 + $0x60] sm:$0xff]  ;;  %6677 = vst [vmem:[#allocation25_spill] sm:$0xff] %v5942_v57 }
  0x61   : > { %4895 = vmatprep.mubr.msk.f32.mxu0 %vm255_vm1, %v5863_v60  ;;  %4766 = vmatprep.subr.msk.mxu1 %vm352_vm0, %v5868_v61  ;;  %6676 = vst [vmem:[#allocation24_spill] sm:$0xff] %v5928_v10  ;;  %v6008_v59 = vld [vmem:[%s5567_s11 + $0xc0] sm:$0xff] }
  0x63   : > { %4672 = vmatmul.mubr.msk.f32.gmra.mrb[2].mxu1 %vm255_vm1, %v5878_v62  ;;  %4896 = vmatmul.mubr.msk.f32.gmra.mrb[18].mxu0 %vm255_vm1, %v5881_v63  ;;  %v6002_v62 = vld [vmem:[%s5567_s11 + $0xb0] sm:$0xff] }
  0x64   : > { %4674 = vmatprep.mubr.msk.f32.mxu1 %vm255_vm1, %v5886_v0  ;;  %4898 = vmatprep.mubr.msk.f32.mxu0 %vm255_vm1, %v5889_v2  ;;  %6685 = vst [vmem:[#allocation33_spill] sm:$0xff] %v6002_v62 }
  0x67   : > { %4675 = vmatmul.mubr.msk.f32.gmra.mrb[4].mxu1 %vm255_vm1, %v5902_v3  ;;  %4899 = vmatmul.mubr.msk.f32.gmra.mrb[20].mxu0 %vm255_vm1, %v5905_v4 }
  0x68   : > { %4677 = vmatprep.mubr.msk.f32.mxu1 %vm255_vm1, %v5908_v5  ;;  %4901 = vmatprep.mubr.msk.f32.mxu0 %vm255_vm1, %v5911_v6 }
  0x6b   : > { %4678 = vmatmul.mubr.msk.f32.gmra.mrb[6].mxu1 %vm255_vm1, %v5922_v7  ;;  %4902 = vmatmul.mubr.msk.f32.gmra.mrb[22].mxu0 %vm255_vm1, %v5925_v9 }
  0x6c   : > { %4680 = vmatprep.mubr.msk.f32.mxu1 %vm255_vm1, %v5928_v10  ;;  %4904 = vmatprep.mubr.msk.f32.mxu0 %vm255_vm1, %v5931_v55 }
  0x6f   : > { %4681 = vmatmul.mubr.msk.f32.gmra.mrb[8].mxu1 %vm255_vm1, %v5942_v57  ;;  %4905 = vmatmul.mubr.msk.f32.gmra.mrb[24].mxu0 %vm255_vm1, %v5945_v53 }
  0x70   : > { %4683 = vmatprep.mubr.msk.f32.mxu1 %vm255_vm1, %v5948_v51  ;;  %4907 = vmatprep.mubr.msk.f32.mxu0 %vm255_vm1, %v5951_v49 }
  0x73   : > { %4684 = vmatmul.mubr.msk.f32.gmra.mrb[10].mxu1 %vm255_vm1, %v5962_v47  ;;  %4908 = vmatmul.mubr.msk.f32.gmra.mrb[26].mxu0 %vm255_vm1, %v5965_v45 }
  0x74   : > { %4686 = vmatprep.mubr.msk.f32.mxu1 %vm255_vm1, %v5968_v43  ;;  %4910 = vmatprep.mubr.msk.f32.mxu0 %vm255_vm1, %v5971_v41 }
  0x77   : > { %4687 = vmatmul.mubr.msk.f32.gmra.mrb[12].mxu1 %vm255_vm1, %v5982_v39  ;;  %4911 = vmatmul.mubr.msk.f32.gmra.mrb[28].mxu0 %vm255_vm1, %v5985_v37  ;;  %v6027_v37 = vld [vmem:[%s6607_s1 + $0x20] sm:$0xf] }
  0x78   : > { %4689 = vmatprep.mubr.msk.f32.mxu1 %vm255_vm1, %v5988_v35  ;;  %4913 = vmatprep.mubr.msk.f32.mxu0 %vm255_vm1, %v5991_v33  ;;  %v6019_v33 = vld [vmem:[%s5567_s11 + $0xc8] sm:$0xff] }
  0x79   : > { %6687 = vst [vmem:[#allocation35_spill] sm:$0xff] %v6019_v33 }
  0x7b   : > { %4690 = vmatmul.mubr.msk.f32.gmra.mrb[14].mxu1 %vm255_vm1, %v6002_v62  ;;  %4914 = vmatmul.mubr.msk.f32.gmra.mrb[30].mxu0 %vm255_vm1, %v6005_v31  ;;  %v6038_v31 = vld [vmem:[%s5567_s11 + $0xe0] sm:$0xff] }
  0x7c   : > { %4692 = vmatprep.mubr.msk.f32.mxu1 %vm255_vm1, %v6008_v59  ;;  %4918 = vmatprep.mubr.msk.f32.mxu0 %vm255_vm1, %v5886_v0  ;;  %v6043_v0 = vld [vmem:[%s5567_s11 + $0xf0] sm:$0xff] }
  0x7f   : > { %4693 = vmatmul.mubr.msk.f32.gmra.mrb[16].mxu1 %vm255_vm1, %v6019_v33  ;;  %4919 = vmatmul.mubr.msk.f32.vlgmr.msra.gmra.mrb[0].mxu0 %vm255_vm1, %v5902_v3  ;;  %v905_v3 = vld [vmem:[%s5567_s11 + $0x2] sm:$0xff] }
  0x80   : > { %4967 = vmatpush3.msk.msra.mxu0 %vm352_vm0, %v5705_v28  ;;  %4695 = vmatprep.mubr.msk.f32.mxu1 %vm255_vm1, %v6022_v29  ;;  %v6056_v28 = vld [vmem:[%s5567_s11 + $0xf8] sm:$0xff] }
  0x81   : > { %4921 = vmatprep.mubr.msk.f32.mxu0 %vm255_vm1, %v5908_v5  ;;  %5016 = vmatprep.subr.msk.mxu0 %vm352_vm0, %v6027_v37  ;;  %v6059_v5 = vld [vmem:[%s5567_s11 + $0x108] sm:$0xff] }
  0x83   : > { %4696 = vmatmul.mubr.msk.f32.gmra.mrb[18].mxu1 %vm255_vm1, %v6038_v31  ;;  %4922 = vmatmul.mubr.msk.f32.gmra.mrb[2].mxu0 %vm255_vm1, %v5922_v7  ;;  %v6070_v7 = vld [vmem:[%s5567_s11 + $0x110] sm:$0xff] }
  0x84   : > { %4698 = vmatprep.mubr.msk.f32.mxu1 %vm255_vm1, %v6043_v0  ;;  %4924 = vmatprep.mubr.msk.f32.mxu0 %vm255_vm1, %v5928_v10  ;;  %v6073_v10 = vld [vmem:[%s5567_s11 + $0x120] sm:$0xff] }
  0x87   : > { %4699 = vmatmul.mubr.msk.f32.gmra.mrb[20].mxu1 %vm255_vm1, %v6056_v28  ;;  %4925 = vmatmul.mubr.msk.f32.gmra.mrb[4].mxu0 %vm255_vm1, %v5942_v57  ;;  %v6084_v57 = vld [vmem:[%s5567_s11 + $0x128] sm:$0xff] }
  0x88   : > { %4701 = vmatprep.mubr.msk.f32.mxu1 %vm255_vm1, %v6059_v5  ;;  %4927 = vmatprep.mubr.msk.f32.mxu0 %vm255_vm1, %v5948_v51  ;;  %v6087_v51 = vld [vmem:[%s5567_s11 + $0x138] sm:$0xff] }
  0x8b   : > { %4702 = vmatmul.mubr.msk.f32.gmra.mrb[22].mxu1 %vm255_vm1, %v6070_v7  ;;  %4928 = vmatmul.mubr.msk.f32.gmra.mrb[6].mxu0 %vm255_vm1, %v5962_v47  ;;  %v6098_v47 = vld [vmem:[%s5567_s11 + $0x140] sm:$0xff] }
  0x8c   : > { %4704 = vmatprep.mubr.msk.f32.mxu1 %vm255_vm1, %v6073_v10  ;;  %4930 = vmatprep.mubr.msk.f32.mxu0 %vm255_vm1, %v5968_v43  ;;  %v6101_v43 = vld [vmem:[%s5567_s11 + $0x150] sm:$0xff] }
  0x8f   : > { %4705 = vmatmul.mubr.msk.f32.gmra.mrb[24].mxu1 %vm255_vm1, %v6084_v57  ;;  %4931 = vmatmul.mubr.msk.f32.gmra.mrb[8].mxu0 %vm255_vm1, %v5982_v39  ;;  %v6112_v39 = vld [vmem:[%s5567_s11 + $0x158] sm:$0xff] }
  0x90   : > { %4707 = vmatprep.mubr.msk.f32.mxu1 %vm255_vm1, %v6087_v51  ;;  %4933 = vmatprep.mubr.msk.f32.mxu0 %vm255_vm1, %v5988_v35  ;;  %v6115_v35 = vld [vmem:[%s5567_s11 + $0x168] sm:$0xff] }
  0x93   : > { %4708 = vmatmul.mubr.msk.f32.gmra.mrb[26].mxu1 %vm255_vm1, %v6098_v47  ;;  %4934 = vmatmul.mubr.msk.f32.gmra.mrb[10].mxu0 %vm255_vm1, %v6002_v62  ;;  %v6126_v62 = vld [vmem:[%s5567_s11 + $0x170] sm:$0xff] }
  0x94   : > { %4710 = vmatprep.mubr.msk.f32.mxu1 %vm255_vm1, %v6101_v43  ;;  %4936 = vmatprep.mubr.msk.f32.mxu0 %vm255_vm1, %v6008_v59 }
  0x97   : > { %4711 = vmatmul.mubr.msk.f32.gmra.mrb[28].mxu1 %vm255_vm1, %v6112_v39  ;;  %4937 = vmatmul.mubr.msk.f32.gmra.mrb[12].mxu0 %vm255_vm1, %v6019_v33  ;;  %v906_v33 = vld [vmem:[%s5567_s11 + $0xa] sm:$0xff] }
  0x98   : > { %4713 = vmatprep.mubr.msk.f32.mxu1 %vm255_vm1, %v6115_v35  ;;  %4939 = vmatprep.mubr.msk.f32.mxu0 %vm255_vm1, %v6022_v29 }
  0x9b   : > { %4714 = vmatmul.mubr.msk.f32.gmra.mrb[30].mxu1 %vm255_vm1, %v6126_v62  ;;  %4940 = vmatmul.mubr.msk.f32.gmra.mrb[14].mxu0 %vm255_vm1, %v6038_v31 }
  0x9c   : > { %4718 = vmatprep.mubr.msk.f32.mxu1 %vm255_vm1, %v905_v3  ;;  %4942 = vmatprep.mubr.msk.f32.mxu0 %vm255_vm1, %v6043_v0  ;;  %v6704_v3 = vld [vmem:[#allocation25_spill] sm:$0xff] }
  0x9f   : > { %4719 = vmatmul.mubr.msk.f32.vlgmr.msra.gmra.mrb[0].mxu1 %vm255_vm1, %v906_v33  ;;  %4943 = vmatmul.mubr.msk.f32.gmra.mrb[16].mxu0 %vm255_vm1, %v6056_v28  ;;  %v4144_v33 = vld [vmem:[%s5567_s11 + $0x198] sm:$0xff] }
  0xa0   : > { %4767 = vmatpush3.msk.msra.mxu1 %vm352_vm0, %v5868_v61  ;;  %4721 = vmatprep.mubr.msk.f32.mxu1 %vm255_vm1, %v5683_v24  ;;  %v6181_v24 = vld [vmem:[%s5567_s11 + $0x180] sm:$0xff] }
  0xa1   : > { %4945 = vmatprep.mubr.msk.f32.mxu0 %vm255_vm1, %v6059_v5  ;;  %5066 = vmatprep.subr.msk.mxu1 %vm352_vm0, %v5546_v1  ;;  %v4145_v61 = vld [vmem:[%s5567_s11 + $0x1a0] sm:$0xff] }
  0xa3   : > { %4722 = vmatmul.mubr.msk.f32.gmra.mrb[2].mxu1 %vm255_vm1, %v5694_v25  ;;  %4946 = vmatmul.mubr.msk.f32.gmra.mrb[18].mxu0 %vm255_vm1, %v6070_v7  ;;  %v6192_v25 = vld [vmem:[%s5567_s11 + $0x188] sm:$0xff] }
  0xa4   : > { %4724 = vmatprep.mubr.msk.f32.mxu1 %vm255_vm1, %v5700_v27  ;;  %4948 = vmatprep.mubr.msk.f32.mxu0 %vm255_vm1, %v6073_v10 }
  0xa7   : > { %4725 = vmatmul.mubr.msk.f32.gmra.mrb[4].mxu1 %vm255_vm1, %v5718_v30  ;;  %4949 = vmatmul.mubr.msk.f32.gmra.mrb[20].mxu0 %vm255_vm1, %v6084_v57 }
  0xa8   : > { %4727 = vmatprep.mubr.msk.f32.mxu1 %vm255_vm1, %v5726_v32  ;;  %4951 = vmatprep.mubr.msk.f32.mxu0 %vm255_vm1, %v6087_v51 }
  0xab   : > { %4728 = vmatmul.mubr.msk.f32.gmra.mrb[6].mxu1 %vm255_vm1, %v5742_v34  ;;  %4952 = vmatmul.mubr.msk.f32.gmra.mrb[22].mxu0 %vm255_vm1, %v6098_v47 }
  0xac   : > { %4730 = vmatprep.mubr.msk.f32.mxu1 %vm255_vm1, %v5748_v36  ;;  %4954 = vmatprep.mubr.msk.f32.mxu0 %vm255_vm1, %v6101_v43 }
  0xaf   : > { %4731 = vmatmul.mubr.msk.f32.gmra.mrb[8].mxu1 %vm255_vm1, %v5762_v38  ;;  %4955 = vmatmul.mubr.msk.f32.gmra.mrb[24].mxu0 %vm255_vm1, %v6112_v39 }
  0xb0   : > { %4733 = vmatprep.mubr.msk.f32.mxu1 %vm255_vm1, %v5768_v40  ;;  %4957 = vmatprep.mubr.msk.f32.mxu0 %vm255_vm1, %v6115_v35 }
  0xb3   : > { %4734 = vmatmul.mubr.msk.f32.gmra.mrb[10].mxu1 %vm255_vm1, %v5782_v42  ;;  %4958 = vmatmul.mubr.msk.f32.gmra.mrb[26].mxu0 %vm255_vm1, %v6126_v62 }
  0xb4   : > { %4736 = vmatprep.mubr.msk.f32.mxu1 %vm255_vm1, %v5788_v44  ;;  %4960 = vmatprep.mubr.msk.f32.mxu0 %vm255_vm1, %v6181_v24 }
  0xb7   : > { %4737 = vmatmul.mubr.msk.f32.gmra.mrb[12].mxu1 %vm255_vm1, %v5802_v46  ;;  %4961 = vmatmul.mubr.msk.f32.gmra.mrb[28].mxu0 %vm255_vm1, %v6192_v25 }
  0xb8   : > { %4739 = vmatprep.mubr.msk.f32.mxu1 %vm255_vm1, %v5808_v48  ;;  %4963 = vmatprep.mubr.msk.f32.mxu0 %vm255_vm1, %v4144_v33  ;;  %v6705_v33 = vld [vmem:[#allocation13_spill] sm:$0xff] }
  0xbb   : > { %4740 = vmatmul.mubr.msk.f32.gmra.mrb[14].mxu1 %vm255_vm1, %v5822_v50  ;;  %4964 = vmatmul.mubr.msk.f32.gmra.mrb[30].mxu0 %vm255_vm1, %v4145_v61  ;;  %v6706_v61 = vld [vmem:[#allocation26_spill] sm:$0xff] }
  0xbc   : > { %4742 = vmatprep.mubr.msk.f32.mxu1 %vm255_vm1, %v5828_v52  ;;  %4968 = vmatprep.mubr.msk.f32.mxu0 %vm255_vm1, %v5576_v8  ;;  %v6688_v8 = vld [vmem:[#allocation30_spill] sm:$0xff] }
  0xbf   : > { %4743 = vmatmul.mubr.msk.f32.gmra.mrb[16].mxu1 %vm255_vm1, %v5842_v54  ;;  %4969 = vmatmul.mubr.msk.f32.vlgmr.msra.gmra.mrb[0].mxu0 %vm255_vm1, %v5591_v11  ;;  %v6689_v11 = vld [vmem:[#allocation5_spill] sm:$0xff] }
  0xc0   : > { %5017 = vmatpush3.msk.msra.mxu0 %vm352_vm0, %v6027_v37  ;;  %4745 = vmatprep.mubr.msk.f32.mxu1 %vm255_vm1, %v5846_v56  ;;  %v6703_v37 = vld [vmem:[#allocation12_spill] sm:$0xff] }
  0xc1   : > { %4971 = vmatprep.mubr.msk.f32.mxu0 %vm255_vm1, %v5597_v12  ;;  %v6690_v12 = vld [vmem:[#allocation18_spill] sm:$0xff] }
  0xc3   : > { %4746 = vmatmul.mubr.msk.f32.gmra.mrb[18].mxu1 %vm255_vm1, %v5857_v58  ;;  %4972 = vmatmul.mubr.msk.f32.gmra.mrb[2].mxu0 %vm255_vm1, %v5610_v13  ;;  %v6691_v13 = vld [vmem:[#allocation6_spill] sm:$0xff] }
  0xc4   : > { %4748 = vmatprep.mubr.msk.f32.mxu1 %vm255_vm1, %v5863_v60  ;;  %4974 = vmatprep.mubr.msk.f32.mxu0 %vm255_vm1, %v5613_v14  ;;  %v6692_v14 = vld [vmem:[#allocation19_spill] sm:$0xff] }
  0xc7   : > { %4749 = vmatmul.mubr.msk.f32.gmra.mrb[20].mxu1 %vm255_vm1, %v5881_v63  ;;  %4975 = vmatmul.mubr.msk.f32.gmra.mrb[4].mxu0 %vm255_vm1, %v5624_v15  ;;  %v6693_v15 = vld [vmem:[#allocation7_spill] sm:$0xff] }
  0xc8   : > { %4751 = vmatprep.mubr.msk.f32.mxu1 %vm255_vm1, %v5889_v2  ;;  %4977 = vmatprep.mubr.msk.f32.mxu0 %vm255_vm1, %v5627_v16  ;;  %v6694_v16 = vld [vmem:[#allocation20_spill] sm:$0xff] }
  0xcb   : > { %4752 = vmatmul.mubr.msk.f32.gmra.mrb[22].mxu1 %vm255_vm1, %v5905_v4  ;;  %4978 = vmatmul.mubr.msk.f32.gmra.mrb[6].mxu0 %vm255_vm1, %v5638_v17  ;;  %v6695_v17 = vld [vmem:[#allocation8_spill] sm:$0xff] }
  0xcc   : > { %4754 = vmatprep.mubr.msk.f32.mxu1 %vm255_vm1, %v5911_v6  ;;  %4980 = vmatprep.mubr.msk.f32.mxu0 %vm255_vm1, %v5641_v18  ;;  %v6696_v18 = vld [vmem:[#allocation21_spill] sm:$0xff] }
  0xcf   : > { %4755 = vmatmul.mubr.msk.f32.gmra.mrb[24].mxu1 %vm255_vm1, %v5925_v9  ;;  %4981 = vmatmul.mubr.msk.f32.gmra.mrb[8].mxu0 %vm255_vm1, %v5652_v19  ;;  %v6697_v19 = vld [vmem:[#allocation9_spill] sm:$0xff] }
  0xd0   : > { %4757 = vmatprep.mubr.msk.f32.mxu1 %vm255_vm1, %v5931_v55  ;;  %4983 = vmatprep.mubr.msk.f32.mxu0 %vm255_vm1, %v5655_v20  ;;  %v6698_v20 = vld [vmem:[#allocation22_spill] sm:$0xff] }
  0xd3   : > { %4758 = vmatmul.mubr.msk.f32.gmra.mrb[26].mxu1 %vm255_vm1, %v5945_v53  ;;  %4984 = vmatmul.mubr.msk.f32.gmra.mrb[10].mxu0 %vm255_vm1, %v5666_v21  ;;  %v6699_v21 = vld [vmem:[#allocation10_spill] sm:$0xff] }
  0xd4   : > { %4760 = vmatprep.mubr.msk.f32.mxu1 %vm255_vm1, %v5951_v49  ;;  %4986 = vmatprep.mubr.msk.f32.mxu0 %vm255_vm1, %v5669_v22  ;;  %v6701_v22 = vld [vmem:[#allocation11_spill] sm:$0xff] }
  0xd7   : > { %4761 = vmatmul.mubr.msk.f32.gmra.mrb[28].mxu1 %vm255_vm1, %v5965_v45  ;;  %4987 = vmatmul.mubr.msk.f32.gmra.mrb[12].mxu0 %vm255_vm1, %v5680_v23  ;;  %v6702_v23 = vld [vmem:[#allocation24_spill] sm:$0xff] }
  0xd8   : > { %4763 = vmatprep.mubr.msk.f32.mxu1 %vm255_vm1, %v5971_v41  ;;  %4989 = vmatprep.mubr.msk.f32.mxu0 %vm255_vm1, %v5697_v26 }
  0xdb   : > { %4764 = vmatmul.mubr.msk.f32.gmra.mrb[30].mxu1 %vm255_vm1, %v6688_v8  ;;  %4990 = vmatmul.mubr.msk.f32.gmra.mrb[14].mxu0 %vm255_vm1, %v6689_v11  ;;  %v6715_v8 = vld [vmem:[#allocation33_spill] sm:$0xff] }
  0xdc   : > { %4768 = vmatprep.mubr.msk.f32.mxu1 %vm255_vm1, %v6690_v12  ;;  %4992 = vmatprep.mubr.msk.f32.mxu0 %vm255_vm1, %v6691_v13  ;;  %v6707_v12 = vld [vmem:[#allocation14_spill] sm:$0xff] }
  0xdf   : > { %4769 = vmatmul.mubr.msk.f32.vlgmr.msra.gmra.mrb[0].mxu1 %vm255_vm1, %v6692_v14  ;;  %4993 = vmatmul.mubr.msk.f32.gmra.mrb[16].mxu0 %vm255_vm1, %v6693_v15  ;;  %v6708_v14 = vld [vmem:[#allocation27_spill] sm:$0xff] }
  0xe0   : > { %5067 = vmatpush3.msk.msra.mxu1 %vm352_vm0, %v5546_v1  ;;  %4771 = vmatprep.mubr.msk.f32.mxu1 %vm255_vm1, %v6694_v16  ;;  %v6700_v1 = vld [vmem:[#allocation23_spill] sm:$0xff] }
  0xe1   : > { %4995 = vmatprep.mubr.msk.f32.mxu0 %vm255_vm1, %v6695_v17  ;;  %v6709_v16 = vld [vmem:[#allocation15_spill] sm:$0xff] }
  0xe3   : > { %4772 = vmatmul.mubr.msk.f32.gmra.mrb[2].mxu1 %vm255_vm1, %v6696_v18  ;;  %4996 = vmatmul.mubr.msk.f32.gmra.mrb[18].mxu0 %vm255_vm1, %v6697_v19  ;;  %v6710_v18 = vld [vmem:[#allocation28_spill] sm:$0xff] }
  0xe4   : > { %4774 = vmatprep.mubr.msk.f32.mxu1 %vm255_vm1, %v6698_v20  ;;  %4998 = vmatprep.mubr.msk.f32.mxu0 %vm255_vm1, %v6699_v21  ;;  %v6711_v20 = vld [vmem:[#allocation16_spill] sm:$0xff] }
  0xe7   : > { %4775 = vmatmul.mubr.msk.f32.gmra.mrb[4].mxu1 %vm255_vm1, %v6700_v1  ;;  %4999 = vmatmul.mubr.msk.f32.gmra.mrb[20].mxu0 %vm255_vm1, %v6701_v22  ;;  %v6319_v1 = vld [vmem:[%s5567_s11 + $0x181] sm:$0xff] }
  0xe8   : > { %4777 = vmatprep.mubr.msk.f32.mxu1 %vm255_vm1, %v6702_v23  ;;  %5001 = vmatprep.mubr.msk.f32.mxu0 %vm255_vm1, %v6703_v37  ;;  %v6712_v23 = vld [vmem:[#allocation29_spill] sm:$0xff] }
  0xeb   : > { %4778 = vmatmul.mubr.msk.f32.gmra.mrb[6].mxu1 %vm255_vm1, %v6704_v3  ;;  %5002 = vmatmul.mubr.msk.f32.gmra.mrb[22].mxu0 %vm255_vm1, %v6705_v33  ;;  %v6713_v3 = vld [vmem:[#allocation17_spill] sm:$0xff] }
  0xec   : > { %4780 = vmatprep.mubr.msk.f32.mxu1 %vm255_vm1, %v6706_v61  ;;  %5004 = vmatprep.mubr.msk.f32.mxu0 %vm255_vm1, %v6707_v12  ;;  %v6714_v61 = vld [vmem:[#allocation31_spill] sm:$0xff] }
  0xef   : > { %4781 = vmatmul.mubr.msk.f32.gmra.mrb[8].mxu1 %vm255_vm1, %v6708_v14  ;;  %5005 = vmatmul.mubr.msk.f32.gmra.mrb[24].mxu0 %vm255_vm1, %v6709_v16  ;;  %v6330_v14 = vld [vmem:[%s5567_s11 + $0x189] sm:$0xff] }
  0xf0   : > { %4783 = vmatprep.mubr.msk.f32.mxu1 %vm255_vm1, %v6710_v18  ;;  %5007 = vmatprep.mubr.msk.f32.mxu0 %vm255_vm1, %v6711_v20  ;;  %v4210_v18 = vld [vmem:[%s5567_s11 + $0x199] sm:$0xff] }
  0xf3   : > { %4784 = vmatmul.mubr.msk.f32.gmra.mrb[10].mxu1 %vm255_vm1, %v6712_v23  ;;  %5008 = vmatmul.mubr.msk.f32.gmra.mrb[26].mxu0 %vm255_vm1, %v6713_v3  ;;  %v4211_v23 = vld [vmem:[%s5567_s11 + $0x1a1] sm:$0xff]  ;;  %v6716_v3 = vld [vmem:[#allocation35_spill] sm:$0xff] }
  0xf4   : > { %4786 = vmatprep.mubr.msk.f32.mxu1 %vm255_vm1, %v6714_v61  ;;  %5010 = vmatprep.mubr.msk.f32.mxu0 %vm255_vm1, %v6319_v1 }
  0xf7   : > { %4787 = vmatmul.mubr.msk.f32.gmra.mrb[12].mxu1 %vm255_vm1, %v6715_v8  ;;  %5011 = vmatmul.mubr.msk.f32.gmra.mrb[28].mxu0 %vm255_vm1, %v6330_v14 }
  0xf8   : > { %4789 = vmatprep.mubr.msk.f32.mxu1 %vm255_vm1, %v6008_v59  ;;  %5013 = vmatprep.mubr.msk.f32.mxu0 %vm255_vm1, %v4210_v18 }
  0xfb   : > { %4790 = vmatmul.mubr.msk.f32.gmra.mrb[14].mxu1 %vm255_vm1, %v6716_v3  ;;  %5014 = vmatmul.mubr.msk.f32.gmra.mrb[30].mxu0 %vm255_vm1, %v4211_v23 }
  0xfc   : > { %4792 = vmatprep.mubr.msk.f32.mxu1 %vm255_vm1, %v6022_v29  ;;  %5018 = vmatprep.mubr.msk.f32.mxu0 %vm255_vm1, %v5700_v27  ;;  %v6718_v27 = vld [vmem:[#allocation32_spill] sm:$0xff] }
  0xfd   : > { %v4276_v29 = vld [vmem:[%s5567_s11 + $0x19a] sm:$0xff] }
  0xff   : > { %4793 = vmatmul.mubr.msk.f32.gmra.mrb[16].mxu1 %vm255_vm1, %v6038_v31  ;;  %5019 = vmatmul.mubr.msk.f32.vlgmr.msra.gmra.mrb[0].mxu0 %vm255_vm1, %v5718_v30  ;;  %v6719_v30 = vld [vmem:[#allocation17_spill] sm:$0xff]  ;;  %v6720_v31 = vld [vmem:[#allocation34_spill] sm:$0xff] }
 0x100   : > { %4795 = vmatprep.mubr.msk.f32.mxu1 %vm255_vm1, %v6043_v0  ;;  %5021 = vmatprep.mubr.msk.f32.mxu0 %vm255_vm1, %v5726_v32  ;;  %v4277_v32 = vld [vmem:[%s5567_s11 + $0x1a2] sm:$0xff]  ;;  %s3727_s11 = sshll.u32 %s6484_s9, 4  ;;  %s6553_s11 = int_to_ptr.vmem [resolvable:$true] %s3727_s11 }
 0x101   : > { %s5382_s23 = scalar_lea.vmem %s6553_s11, 4096  ;;  %p5389_p1 = scmp.lt.s32.totalorder %s6553_s11, %s5387_s27 }
 0x102   : > { %p5383_p12 = scmp.ne.s32.totalorder %s6553_s11, %s5382_s23  ;;  %p5390_p2 = scmp.lt.s32.totalorder %s5388_s28, %s5382_s23 }
 0x103   : > { %4796 = vmatmul.mubr.msk.f32.gmra.mrb[18].mxu1 %vm255_vm1, %v6056_v28  ;;  %5022 = vmatmul.mubr.msk.f32.gmra.mrb[2].mxu0 %vm255_vm1, %v5742_v34 }
 0x104   : > { %4798 = vmatprep.mubr.msk.f32.mxu1 %vm255_vm1, %v6059_v5  ;;  %5024 = vmatprep.mubr.msk.f32.mxu0 %vm255_vm1, %v5748_v36  ;;  %p5384_p13 = pnand %p5383_p12, %p5525_p4  ;;  %p5391_p3 = por %p5390_p2, %p5389_p1 }
 0x106   : > { %p5385_p0 = pneg %p5384_p13 }
 0x107   : > { %4799 = vmatmul.mubr.msk.f32.gmra.mrb[20].mxu1 %vm255_vm1, %v6070_v7  ;;  %5025 = vmatmul.mubr.msk.f32.gmra.mrb[4].mxu0 %vm255_vm1, %v5762_v38 }
 0x108   : > { %4801 = vmatprep.mubr.msk.f32.mxu1 %vm255_vm1, %v6073_v10  ;;  %5027 = vmatprep.mubr.msk.f32.mxu0 %vm255_vm1, %v5768_v40  ;;  %p5392_p5 = pnand %p5391_p3, %p5385_p0 }
 0x10b   : > { %4802 = vmatmul.mubr.msk.f32.gmra.mrb[22].mxu1 %vm255_vm1, %v6084_v57  ;;  %5028 = vmatmul.mubr.msk.f32.gmra.mrb[6].mxu0 %vm255_vm1, %v5782_v42 }
 0x10c   : > { %4804 = vmatprep.mubr.msk.f32.mxu1 %vm255_vm1, %v6087_v51  ;;  %5030 = vmatprep.mubr.msk.f32.mxu0 %vm255_vm1, %v5788_v44 }
 0x10f   : > { %4805 = vmatmul.mubr.msk.f32.gmra.mrb[24].mxu1 %vm255_vm1, %v6098_v47  ;;  %5031 = vmatmul.mubr.msk.f32.gmra.mrb[8].mxu0 %vm255_vm1, %v5802_v46 }
 0x110   : > { %4807 = vmatprep.mubr.msk.f32.mxu1 %vm255_vm1, %v6101_v43  ;;  %5033 = vmatprep.mubr.msk.f32.mxu0 %vm255_vm1, %v5808_v48 }
 0x113   : > { %4808 = vmatmul.mubr.msk.f32.gmra.mrb[26].mxu1 %vm255_vm1, %v6112_v39  ;;  %5034 = vmatmul.mubr.msk.f32.gmra.mrb[10].mxu0 %vm255_vm1, %v5822_v50 }
 0x114   : > { %4810 = vmatprep.mubr.msk.f32.mxu1 %vm255_vm1, %v6115_v35  ;;  %5036 = vmatprep.mubr.msk.f32.mxu0 %vm255_vm1, %v5828_v52  ;;  %v6480_v52 = vld [vmem:[%s6608_s2] ss:$0 sm:$0xff] }
 0x117   : > { %4811 = vmatmul.mubr.msk.f32.gmra.mrb[28].mxu1 %vm255_vm1, %v6126_v62  ;;  %5037 = vmatmul.mubr.msk.f32.gmra.mrb[12].mxu0 %vm255_vm1, %v5842_v54 }
 0x118   : > { %4813 = vmatprep.mubr.msk.f32.mxu1 %vm255_vm1, %v6181_v24  ;;  %5039 = vmatprep.mubr.msk.f32.mxu0 %vm255_vm1, %v5846_v56 }
 0x11b   : > { %4814 = vmatmul.mubr.msk.f32.gmra.mrb[30].mxu1 %vm255_vm1, %v6192_v25  ;;  %5040 = vmatmul.mubr.msk.f32.gmra.mrb[14].mxu0 %vm255_vm1, %v5857_v58 }
 0x11c   : > { %4842 = vmatprep.mubr.msk.f32.mxu1 %vm255_vm1, %v5697_v26  ;;  %5042 = vmatprep.mubr.msk.f32.mxu0 %vm255_vm1, %v5863_v60  ;;  %v6717_v26 = vld [vmem:[#allocation30_spill] sm:$0xff] }
 0x11f   : > { %4843 = vmatmul.mubr.msk.f32.vlgmr.msra.gmra.mrb[16].mxu1 %vm255_vm1, %v6689_v11  ;;  %5043 = vmatmul.mubr.msk.f32.gmra.mrb[16].mxu0 %vm255_vm1, %v5881_v63 }
 0x120   : > { %4845 = vmatprep.mubr.msk.f32.mxu1 %vm255_vm1, %v6691_v13  ;;  %5045 = vmatprep.mubr.msk.f32.mxu0 %vm255_vm1, %v5889_v2 }
 0x123   : > { %4846 = vmatmul.mubr.msk.f32.gmra.mrb[18].mxu1 %vm255_vm1, %v6693_v15  ;;  %5046 = vmatmul.mubr.msk.f32.gmra.mrb[18].mxu0 %vm255_vm1, %v5905_v4 }
 0x124   : > { %4848 = vmatprep.mubr.msk.f32.mxu1 %vm255_vm1, %v6695_v17  ;;  %5048 = vmatprep.mubr.msk.f32.mxu0 %vm255_vm1, %v5911_v6 }
 0x127   : > { %4849 = vmatmul.mubr.msk.f32.gmra.mrb[20].mxu1 %vm255_vm1, %v6697_v19  ;;  %5049 = vmatmul.mubr.msk.f32.gmra.mrb[20].mxu0 %vm255_vm1, %v5925_v9 }
 0x128   : > { %4851 = vmatprep.mubr.msk.f32.mxu1 %vm255_vm1, %v6699_v21  ;;  %5051 = vmatprep.mubr.msk.f32.mxu0 %vm255_vm1, %v5931_v55 }
 0x12b   : > { %4852 = vmatmul.mubr.msk.f32.gmra.mrb[22].mxu1 %vm255_vm1, %v6701_v22  ;;  %5052 = vmatmul.mubr.msk.f32.gmra.mrb[22].mxu0 %vm255_vm1, %v5945_v53 }
 0x12c   : > { %4854 = vmatprep.mubr.msk.f32.mxu1 %vm255_vm1, %v6703_v37  ;;  %5054 = vmatprep.mubr.msk.f32.mxu0 %vm255_vm1, %v5951_v49 }
 0x12f   : > { %4855 = vmatmul.mubr.msk.f32.gmra.mrb[24].mxu1 %vm255_vm1, %v6705_v33  ;;  %5055 = vmatmul.mubr.msk.f32.gmra.mrb[24].mxu0 %vm255_vm1, %v5965_v45 }
 0x130   : > { %4857 = vmatprep.mubr.msk.f32.mxu1 %vm255_vm1, %v6707_v12  ;;  %5057 = vmatprep.mubr.msk.f32.mxu0 %vm255_vm1, %v5971_v41 }
 0x133   : > { %4858 = vmatmul.mubr.msk.f32.gmra.mrb[26].mxu1 %vm255_vm1, %v6709_v16  ;;  %5058 = vmatmul.mubr.msk.f32.gmra.mrb[26].mxu0 %vm255_vm1, %v6717_v26 }
 0x134   : > { %4860 = vmatprep.mubr.msk.f32.mxu1 %vm255_vm1, %v6711_v20  ;;  %5060 = vmatprep.mubr.msk.f32.mxu0 %vm255_vm1, %v6718_v27 }
 0x137   : > { %4861 = vmatmul.mubr.msk.f32.gmra.mrb[28].mxu1 %vm255_vm1, %v6719_v30  ;;  %5061 = vmatmul.mubr.msk.f32.gmra.mrb[28].mxu0 %vm255_vm1, %v6720_v31 }
 0x138   : > { %4863 = vmatprep.mubr.msk.f32.mxu1 %vm255_vm1, %v6319_v1  ;;  %5063 = vmatprep.mubr.msk.f32.mxu0 %vm255_vm1, %v4276_v29 }
 0x13b   : > { %4864 = vmatmul.mubr.msk.f32.gmra.mrb[30].mxu1 %vm255_vm1, %v6330_v14  ;;  %5064 = vmatmul.mubr.msk.f32.gmra.mrb[30].mxu0 %vm255_vm1, %v4277_v32 }
 0x1b2   : > { %v4770_v34 = vpop.f32.mrb[0].mxu1 }
 0x1b3   : > { %v1497_v35 = vpop.f32.mrb[1].mxu1 }
 0x1b6   : > { %v4773_v36 = vpop.f32.mrb[2].mxu1 }
 0x1b7   : > { %v1507_v38 = vpop.f32.mrb[3].mxu1 }
 0x1ba   : > { %v4776_v39 = vpop.f32.mrb[4].mxu1 }
 0x1bb   : > { %v1517_v40 = vpop.f32.mrb[5].mxu1 }
 0x1be   : > { %v4779_v41 = vpop.f32.mrb[6].mxu1 }
 0x1bf   : > { %v1527_v42 = vpop.f32.mrb[7].mxu1 }
 0x1c2   : > { %v4782_v43 = vpop.f32.mrb[8].mxu1 }
 0x1c3   : > { %v1537_v44 = vpop.f32.mrb[9].mxu1 }
 0x1c6   : > { %v4785_v45 = vpop.f32.mrb[10].mxu1 }
 0x1c7   : > { %v1547_v46 = vpop.f32.mrb[11].mxu1 }
 0x1ca   : > { %v4788_v47 = vpop.f32.mrb[12].mxu1 }
 0x1cb   : > { %v1557_v48 = vpop.f32.mrb[13].mxu1 }
 0x1ce   : > { %v4791_v49 = vpop.f32.mrb[14].mxu1 }
 0x1cf   : > { %v6473_v50 = vpop.f32.mrb[15].mxu1 }
 0x1d2   : > { %v5020_v51 = vpop.f32.mrb[0].mxu0 }
 0x1d3   : > { %v5068_v53 = vadd.f32 %v5020_v51, %v4770_v34  ;;  %v3450_v54 = vpop.f32.mrb[1].mxu0 }
 0x1d4   : > { %v5069_v56 = vadd.f32 %v3450_v54, %v1497_v35 }
 0x1d5   : > { %v3649_v58 = vadd.f32 %v5068_v53, %v6480_v52 }
 0x1d6   : > { %v3648_v59 = vadd.f32 %v5069_v56, %v6480_v52  ;;  %v5023_v60 = vpop.f32.mrb[2].mxu0 }
 0x1d7   : > { %3681 = vst [vmem:[%s6484_s9 + $0x8] sm:$0xff] %v3649_v58  ;;  %v5070_v62 = vadd.f32 %v5023_v60, %v4773_v36  ;;  %v3460_v63 = vpop.f32.mrb[3].mxu0 }
 0x1d8   : > { %3680 = vst [vmem:[%s6484_s9] sm:$0xff] %v3648_v59  ;;  %v5071_v0 = vadd.f32 %v3460_v63, %v1507_v38 }
 0x1d9   : > { %v3651_v2 = vadd.f32 %v5070_v62, %v6480_v52 }
 0x1da   : > { %v3650_v4 = vadd.f32 %v5071_v0, %v6480_v52  ;;  %v5026_v5 = vpop.f32.mrb[4].mxu0 }
 0x1db   : > { %3683 = vst [vmem:[%s6484_s9 + $0x18] sm:$0xff] %v3651_v2  ;;  %v5072_v6 = vadd.f32 %v5026_v5, %v4776_v39  ;;  %v3470_v7 = vpop.f32.mrb[5].mxu0 }
 0x1dc   : > { %3682 = vst [vmem:[%s6484_s9 + $0x10] sm:$0xff] %v3650_v4  ;;  %v5073_v9 = vadd.f32 %v3470_v7, %v1517_v40 }
 0x1dd   : > { %v3653_v10 = vadd.f32 %v5072_v6, %v6480_v52 }
 0x1de   : > { %v3652_v55 = vadd.f32 %v5073_v9, %v6480_v52  ;;  %v5029_v57 = vpop.f32.mrb[6].mxu0 }
 0x1df   : > { %3685 = vst [vmem:[%s6484_s9 + $0x28] sm:$0xff] %v3653_v10  ;;  %v5074_v28 = vadd.f32 %v5029_v57, %v4779_v41  ;;  %v3480_v24 = vpop.f32.mrb[7].mxu0 }
 0x1e0   : > { %3684 = vst [vmem:[%s6484_s9 + $0x20] sm:$0xff] %v3652_v55  ;;  %v5075_v25 = vadd.f32 %v3480_v24, %v1527_v42 }
 0x1e1   : > { %v3655_v8 = vadd.f32 %v5074_v28, %v6480_v52 }
 0x1e2   : > { %v3654_v11 = vadd.f32 %v5075_v25, %v6480_v52  ;;  %v5032_v13 = vpop.f32.mrb[8].mxu0 }
 0x1e3   : > { %3687 = vst [vmem:[%s6484_s9 + $0x38] sm:$0xff] %v3655_v8  ;;  %v5076_v15 = vadd.f32 %v5032_v13, %v4782_v43  ;;  %v3490_v17 = vpop.f32.mrb[9].mxu0 }
 0x1e4   : > { %3686 = vst [vmem:[%s6484_s9 + $0x30] sm:$0xff] %v3654_v11  ;;  %v5077_v19 = vadd.f32 %v3490_v17, %v1537_v44 }
 0x1e5   : > { %v3657_v21 = vadd.f32 %v5076_v15, %v6480_v52 }
 0x1e6   : > { %v3656_v22 = vadd.f32 %v5077_v19, %v6480_v52  ;;  %v5035_v37 = vpop.f32.mrb[10].mxu0 }
 0x1e7   : > { %3689 = vst [vmem:[%s6484_s9 + $0x48] sm:$0xff] %v3657_v21  ;;  %v5078_v33 = vadd.f32 %v5035_v37, %v4785_v45  ;;  %v3500_v12 = vpop.f32.mrb[11].mxu0 }
 0x1e8   : > { %3688 = vst [vmem:[%s6484_s9 + $0x40] sm:$0xff] %v3656_v22  ;;  %v5079_v16 = vadd.f32 %v3500_v12, %v1547_v46 }
 0x1e9   : > { %v3659_v20 = vadd.f32 %v5078_v33, %v6480_v52 }
 0x1ea   : > { %v3658_v1 = vadd.f32 %v5079_v16, %v6480_v52  ;;  %v5038_v3 = vpop.f32.mrb[12].mxu0 }
 0x1eb   : > { %3691 = vst [vmem:[%s6484_s9 + $0x58] sm:$0xff] %v3659_v20  ;;  %v5080_v61 = vadd.f32 %v5038_v3, %v4788_v47  ;;  %v3510_v14 = vpop.f32.mrb[13].mxu0 }
 0x1ec   : > { %3690 = vst [vmem:[%s6484_s9 + $0x50] sm:$0xff] %v3658_v1  ;;  %v5081_v18 = vadd.f32 %v3510_v14, %v1557_v48 }
 0x1ed   : > { %v3661_v23 = vadd.f32 %v5080_v61, %v6480_v52 }
 0x1ee   : > { %v3660_v26 = vadd.f32 %v5081_v18, %v6480_v52  ;;  %v5041_v27 = vpop.f32.mrb[14].mxu0 }
 0x1ef   : > { %3693 = vst [vmem:[%s6484_s9 + $0x68] sm:$0xff] %v3661_v23  ;;  %v5082_v29 = vadd.f32 %v5041_v27, %v4791_v49  ;;  %v3520_v30 = vpop.f32.mrb[15].mxu0 }
 0x1f0   : > { %3692 = vst [vmem:[%s6484_s9 + $0x60] sm:$0xff] %v3660_v26  ;;  %v5083_v31 = vadd.f32 %v3520_v30, %v6473_v50 }
 0x1f1   : > { %v3663_v32 = vadd.f32 %v5082_v29, %v6480_v52 }
 0x1f2   : > { %v3662_v34 = vadd.f32 %v5083_v31, %v6480_v52  ;;  %v4844_v35 = vpop.f32.mrb[16].mxu1  ;;  %v5044_v36 = vpop.f32.mrb[16].mxu0 }
 0x1f3   : > { %3695 = vst [vmem:[%s6484_s9 + $0x78] sm:$0xff] %v3663_v32  ;;  %v5084_v38 = vadd.f32 %v5044_v36, %v4844_v35  ;;  %v1967_v39 = vpop.f32.mrb[17].mxu1  ;;  %v3530_v40 = vpop.f32.mrb[17].mxu0 }
 0x1f4   : > { %3694 = vst [vmem:[%s6484_s9 + $0x70] sm:$0xff] %v3662_v34  ;;  %v5085_v41 = vadd.f32 %v3530_v40, %v1967_v39 }
 0x1f5   : > { %v3665_v42 = vadd.f32 %v5084_v38, %v6480_v52 }
 0x1f6   : > { %v3664_v43 = vadd.f32 %v5085_v41, %v6480_v52  ;;  %v4847_v44 = vpop.f32.mrb[18].mxu1  ;;  %v5047_v45 = vpop.f32.mrb[18].mxu0 }
 0x1f7   : > { %3697 = vst [vmem:[%s6484_s9 + $0x88] sm:$0xff] %v3665_v42  ;;  %v5086_v46 = vadd.f32 %v5047_v45, %v4847_v44  ;;  %v1977_v47 = vpop.f32.mrb[19].mxu1  ;;  %v3540_v48 = vpop.f32.mrb[19].mxu0 }
 0x1f8   : > { %3696 = vst [vmem:[%s6484_s9 + $0x80] sm:$0xff] %v3664_v43  ;;  %v5087_v49 = vadd.f32 %v3540_v48, %v1977_v47 }
 0x1f9   : > { %v3667_v50 = vadd.f32 %v5086_v46, %v6480_v52 }
 0x1fa   : > { %v3666_v51 = vadd.f32 %v5087_v49, %v6480_v52  ;;  %v4850_v53 = vpop.f32.mrb[20].mxu1  ;;  %v5050_v54 = vpop.f32.mrb[20].mxu0 }
 0x1fb   : > { %3699 = vst [vmem:[%s6484_s9 + $0x98] sm:$0xff] %v3667_v50  ;;  %v5088_v56 = vadd.f32 %v5050_v54, %v4850_v53  ;;  %v1987_v58 = vpop.f32.mrb[21].mxu1  ;;  %v3550_v59 = vpop.f32.mrb[21].mxu0 }
 0x1fc   : > { %3698 = vst [vmem:[%s6484_s9 + $0x90] sm:$0xff] %v3666_v51  ;;  %v5089_v60 = vadd.f32 %v3550_v59, %v1987_v58 }
 0x1fd   : > { %v3669_v62 = vadd.f32 %v5088_v56, %v6480_v52 }
 0x1fe   : > { %v3668_v63 = vadd.f32 %v5089_v60, %v6480_v52  ;;  %v4853_v0 = vpop.f32.mrb[22].mxu1  ;;  %v5053_v2 = vpop.f32.mrb[22].mxu0 }
 0x1ff   : > { %3701 = vst [vmem:[%s6484_s9 + $0xa8] sm:$0xff] %v3669_v62  ;;  %v5090_v4 = vadd.f32 %v5053_v2, %v4853_v0  ;;  %v1997_v5 = vpop.f32.mrb[23].mxu1  ;;  %v3560_v6 = vpop.f32.mrb[23].mxu0 }
 0x200   : > { %3700 = vst [vmem:[%s6484_s9 + $0xa0] sm:$0xff] %v3668_v63  ;;  %v5091_v7 = vadd.f32 %v3560_v6, %v1997_v5 }
 0x201   : > { %v3671_v9 = vadd.f32 %v5090_v4, %v6480_v52 }
 0x202   : > { %v3670_v10 = vadd.f32 %v5091_v7, %v6480_v52  ;;  %v4856_v55 = vpop.f32.mrb[24].mxu1  ;;  %v5056_v57 = vpop.f32.mrb[24].mxu0 }
 0x203   : > { %3703 = vst [vmem:[%s6484_s9 + $0xb8] sm:$0xff] %v3671_v9  ;;  %v5092_v28 = vadd.f32 %v5056_v57, %v4856_v55  ;;  %v2007_v24 = vpop.f32.mrb[25].mxu1  ;;  %v3570_v25 = vpop.f32.mrb[25].mxu0 }
 0x204   : > { %3702 = vst [vmem:[%s6484_s9 + $0xb0] sm:$0xff] %v3670_v10  ;;  %v5093_v8 = vadd.f32 %v3570_v25, %v2007_v24 }
 0x205   : > { %v3673_v11 = vadd.f32 %v5092_v28, %v6480_v52 }
 0x206   : > { %v3672_v13 = vadd.f32 %v5093_v8, %v6480_v52  ;;  %v4859_v15 = vpop.f32.mrb[26].mxu1  ;;  %v5059_v17 = vpop.f32.mrb[26].mxu0 }
 0x207   : > { %3705 = vst [vmem:[%s6484_s9 + $0xc8] sm:$0xff] %v3673_v11  ;;  %v5094_v19 = vadd.f32 %v5059_v17, %v4859_v15  ;;  %v2017_v21 = vpop.f32.mrb[27].mxu1  ;;  %v3580_v22 = vpop.f32.mrb[27].mxu0 }
 0x208   : > { %3704 = vst [vmem:[%s6484_s9 + $0xc0] sm:$0xff] %v3672_v13  ;;  %v5095_v37 = vadd.f32 %v3580_v22, %v2017_v21 }
 0x209   : > { %v3675_v33 = vadd.f32 %v5094_v19, %v6480_v52 }
 0x20a   : > { %v3674_v12 = vadd.f32 %v5095_v37, %v6480_v52  ;;  %v4862_v16 = vpop.f32.mrb[28].mxu1  ;;  %v5062_v20 = vpop.f32.mrb[28].mxu0 }
 0x20b   : > { %3707 = vst [vmem:[%s6484_s9 + $0xd8] sm:$0xff] %v3675_v33  ;;  %v5096_v1 = vadd.f32 %v5062_v20, %v4862_v16  ;;  %v2027_v3 = vpop.f32.mrb[29].mxu1  ;;  %v3590_v61 = vpop.f32.mrb[29].mxu0 }
 0x20c   : > { %3706 = vst [vmem:[%s6484_s9 + $0xd0] sm:$0xff] %v3674_v12  ;;  %v5097_v14 = vadd.f32 %v3590_v61, %v2027_v3 }
 0x20d   : > { %v3677_v18 = vadd.f32 %v5096_v1, %v6480_v52 }
 0x20e   : > { %v3676_v23 = vadd.f32 %v5097_v14, %v6480_v52  ;;  %v4865_v26 = vpop.f32.mrb[30].mxu1  ;;  %v5065_v27 = vpop.f32.mrb[30].mxu0 }
 0x20f   : > { %3709 = vst [vmem:[%s6484_s9 + $0xe8] sm:$0xff] %v3677_v18  ;;  %v5098_v29 = vadd.f32 %v5065_v27, %v4865_v26  ;;  %v2037_v30 = vpop.f32.mrb[31].mxu1  ;;  %v3600_v31 = vpop.f32.mrb[31].mxu0 }
 0x210   : > { %3708 = vst [vmem:[%s6484_s9 + $0xe0] sm:$0xff] %v3676_v23  ;;  %v5099_v32 = vadd.f32 %v3600_v31, %v2037_v30 }
 0x211   : > { %v3679_v34 = vadd.f32 %v5098_v29, %v6480_v52 }
 0x212   : > { %v3678_v35 = vadd.f32 %v5099_v32, %v6480_v52 }
 0x213   : > { %3711 = vst [vmem:[%s6484_s9 + $0xf8] sm:$0xff] %v3679_v34 }
 0x214   : > { %3710 = vst [vmem:[%s6484_s9 + $0xf0] sm:$0xff] %v3678_v35 }
 0x215   : > { %5395 = shalt.err (!%p5392_p5)
}
 0x216   : > { %s5396_s29 = scalar_lea.hbm %s6551_s21, 4096  ;;  %s5400_s5 = scalar_lea.hbm %s6609_s3, 8192 }
 0x217   : > { %p5397_p6 = scmp.ne.s32.totalorder %s6551_s21, %s5396_s29  ;;  %p5401_p10 = scmp.lt.u32.totalorder %s6551_s21, %s6609_s3 }
 0x218   : > { %p5402_p11 = scmp.lt.u32.totalorder %s5400_s5, %s5396_s29  ;;  %p5404_p13 = scmp.lt.u32.totalorder %s5396_s29, %s6551_s21 }
 0x219   : > { %p5398_p7 = pnand %p5397_p6, %p5525_p4 }
 0x21a   : > { %p5403_p12 = por %p5402_p11, %p5401_p10 }
 0x21b   : > { %p5399_p9 = pneg %p5398_p7 }
 0x21c   : > { %p5405_p0 = por %p5404_p13, %p5403_p12 }
 0x21e   : > { %p5406_p1 = pnand %p5405_p0, %p5399_p9 }
 0x220   : > { %5409 = shalt.err (!%p5406_p1)
}
 0x221   : > { %s5463_s8 = smov 128   ;;  %s5464_s9 = smov 8  }
 0x222   : > { %5325 = dma.vmem_to_hbm [thread:$0]  (%p5525_p4), %s6553_s11, 4096, %s6551_s21, %s6560_s15, %s5463_s8, %s5463_s8, %s5464_s9  }
 0x223 PF: > { %p5331_p2 = scmp.ge.s32.totalorder %s5460_s17, 2  ;;  %s3742_s10 = sand.u32 1, %s5440_s12  }
 0x224   : > { %s3743_s18 = scalar_lea.sflag [#allocation3], %s3742_s10 }
 0x225   : > { %p5328_p3 = pnand %p5331_p2, %p5532_p8 }
 0x227   : > { %5435 = dma.done.wait (!%p5328_p3), %s3743_s18, 4096  }
 0x228   : > { %5437 = vsyncadd (!%p5328_p3), %s3743_s18, 4294963200  ;;  %s16_s17 = sadd.s32 1, %s5460_s17   ;;  %s6721_s12 = smov %s5444_s13 }
 0x229   : > { %p13_p5 = scmp.ge.s32.totalorder %s16_s17, 4   ;;  %s6722_s13 = smov %s5448_s14 }
 0x22a   : > { %s6723_s14 = smov %s5538_s25  ;;  %s6724_s15 = smov %s5456_s16 }
 0x22b   : > { %s6725_s16 = smov %s6727_s20  ;;  %15 = sbr.rel (!%p13_p5) target bundleno = 4 (0x4), region = 78 }
 0x232   :  { %3748 = vsyncpa [#allocation3], 1 }
 0x233   :  { %3750 = vsyncpa [#allocation3 + $0x1], 1 }

</bundles_post_ra>
